<compile_context>
chip_gen: v7x
topology: tpu7x:2x2x1
jax: 0.10.0
libtpu: 0.0.40
codegen_flags: <defaults>
</compile_context>

<pallas_src>
import jax
import jax.numpy as jnp
from jax.experimental import pallas as pl
from jax.experimental.pallas import tpu as pltpu

# ----------------------------- hyper-params ---------------------------------
B, T = 2, 8
EMBED_SIZE = 32
HIDDEN_SIZE = 32
NUM_DIRS = 2
HD = HIDDEN_SIZE // NUM_DIRS          # per-direction hidden size (16)
NUM_TAGS = 8
OUT_PAD = 128                         # lane-dense padded tag dimension
CTI_SIZE = 16                         # char vocab (unused, see TODO)
WTI_SIZE = 64                         # word vocab
CHAR_LEN = 4


# ------------------------------- kernel -------------------------------------
def bilstm_fused_kernel(idxf_ref, idxb_ref, msel_ref, mout_ref,
                        ewb2_ref, whh_ref, wout_ref, bout_ref,
                        o_ref, hs_acc):
    """Fused bi-LSTM + output projection (single invocation, no grid).

    idxf_ref : [B*T, 1] int32  forward word id, row r = b*T + t
    idxb_ref : [B*T, 1] int32  WTI + backward word id (word at time T-1-t)
    msel_ref : [B, T, 2*hd] f32  per-direction mask (fwd cols / bwd cols)
    mout_ref : [B*T, 1] f32      output mask (h *= mask.unsqueeze(2))
    ewb2_ref : [2*WTI, 8*hd]     direction-masked (embed @ wih + b); i/f/o gate
                                 columns pre-scaled by 0.5 (single-tanh trick)
                                 gate col order: [i_f,i_b,f_f,f_b,o_f,o_b,g_f,g_b]
    whh_ref  : [2*hd, 8*hd]      block-diagonal recurrent weights, same col
                                 order, same 0.5 pre-scale on i/f/o columns
    wout_ref : [2*hd, OUT_PAD]   output projection, tag dim zero-padded to 128
    bout_ref : [1, OUT_PAD]
    o_ref    : [B*T, OUT_PAD]
    hs_acc   : VMEM scratch [B, T, 2*hd]  (cols [0:hd]=fwd h, [hd:2*hd]=bwd h)
    """
    hd = HD
    n = B * T

    # ---- embedding lookup + input projection + bias + per-direction time
    #      selection: ONE lane-dense [n,128] x [128,128] matmul --------------
    iota = jax.lax.broadcasted_iota(jnp.int32, (n, 2 * WTI_SIZE), 1)
    onehot = jnp.logical_or(iota == idxf_ref[...],
                            iota == idxb_ref[...]).astype(jnp.float32)
    xg = jnp.dot(onehot, ewb2_ref[...],
                 preferred_element_type=jnp.float32)        # [n, 8*hd]
    xg = xg.reshape(B, T, 8 * hd)    # free: lane dim unchanged, sublane regroup

    whh = whh_ref[...]                                      # [2hd, 8hd]
    msel = msel_ref[...]                                    # [B, T, 2hd]

    h = jnp.zeros((B, 2 * hd), jnp.float32)                 # [h_fwd | h_bwd]
    c = jnp.zeros((B, 2 * hd), jnp.float32)

    # ---- single fused recurrence: fwd walks t, bwd walks T-1-t --------------
    for t in range(T):
        tr = T - 1 - t
        gates = xg[:, t, :] + jnp.dot(h, whh,
                                      preferred_element_type=jnp.float32)
        # single EUP dispatch: sigmoid lanes were pre-scaled by 0.5 in the
        # weights, so sigmoid(x) == 0.5*tanh(gates)+0.5 there; g lanes exact.
        t_all = jnp.tanh(gates)                             # [B, 8hd]
        sig = 0.5 * t_all[:, 0:6 * hd] + 0.5                # [i | f | o] both dirs
        i_g = sig[:, 0:2 * hd]
        f_g = sig[:, 2 * hd:4 * hd]
        o_g = sig[:, 4 * hd:6 * hd]
        g = t_all[:, 6 * hd:8 * hd]

        c_new = f_g * c + i_g * g
        h_new = o_g * jnp.tanh(c_new)

        # packed-sequence semantics: freeze state where mask == 0 (per dir)
        m_t = msel[:, t, :]                                 # [B, 2hd]
        h = m_t * h_new + (1.0 - m_t) * h
        c = m_t * c_new + (1.0 - m_t) * c

        # scatter into the time-ordered hidden-state scratch
        hs_acc[:, t, 0:hd] = h[:, 0:hd]                     # forward h @ time t
        hs_acc[:, tr, hd:2 * hd] = h[:, hd:2 * hd]          # backward h @ time tr

    # ---- output projection (lane-dense) + mask, single unmasked store -------
    hs = hs_acc[...].reshape(n, 2 * hd)        # layout-identical reshape (free)
    logits = jnp.dot(hs, wout_ref[...],
                     preferred_element_type=jnp.float32) + bout_ref[...]
    o_ref[...] = logits * mout_ref[...]        # h *= mask.unsqueeze(2)


# ------------------------------- params --------------------------------------
def make_params(key):
    ks = jax.random.split(key, 12)
    u = lambda k, shape, s: jax.random.uniform(k, shape, jnp.float32, -s, s)
    s_rnn = 1.0 / jnp.sqrt(HD)
    s_out = 1.0 / jnp.sqrt(HIDDEN_SIZE)
    p = {
        "word_embed": jax.random.normal(ks[0], (WTI_SIZE, EMBED_SIZE), jnp.float32) * 0.1,
        # forward direction LSTM (pre-transposed: [E,4H], [H,4H]); gate order i,f,g,o
        "wih_f": u(ks[1], (EMBED_SIZE, 4 * HD), s_rnn),
        "whh_f": u(ks[2], (HD, 4 * HD), s_rnn),
        "b_f":   u(ks[3], (1, 4 * HD), s_rnn) + u(ks[4], (1, 4 * HD), s_rnn),  # b_ih + b_hh
        # backward direction LSTM
        "wih_b": u(ks[5], (EMBED_SIZE, 4 * HD), s_rnn),
        "whh_b": u(ks[6], (HD, 4 * HD), s_rnn),
        "b_b":   u(ks[7], (1, 4 * HD), s_rnn) + u(ks[8], (1, 4 * HD), s_rnn),
        # output linear (pre-transposed: [HIDDEN, num_tags])
        "w_out": u(ks[9], (HIDDEN_SIZE, NUM_TAGS), s_out),
        "b_out": u(ks[10], (1, NUM_TAGS), s_out),
    }
    return p


def _split_gates(w, hd):
    """PyTorch LSTM gate order along the last axis: i, f, g, o."""
    return dict(i=w[..., 0 * hd:1 * hd], f=w[..., 1 * hd:2 * hd],
                g=w[..., 2 * hd:3 * hd], o=w[..., 3 * hd:4 * hd])


def prepare_fused_params(p):
    """One-time weight repacking for the fused kernel (done outside jit).

    NOTE: gate-column order [i_f,i_b,f_f,f_b,o_f,o_b,g_f,g_b] is load-bearing;
    it must match the kernel's 6*hd (sigmoid) / 2*hd (tanh) split.
    """
    hd = HD
    gf_ih, gb_ih = _split_gates(p["wih_f"], hd), _split_gates(p["wih_b"], hd)
    gf_hh, gb_hh = _split_gates(p["whh_f"], hd), _split_gates(p["whh_b"], hd)
    gf_b, gb_b = _split_gates(p["b_f"], hd), _split_gates(p["b_b"], hd)

    def interleave(gf, gb):   # columns: [i_f,i_b,f_f,f_b,o_f,o_b,g_f,g_b]
        return jnp.concatenate([gf["i"], gb["i"], gf["f"], gb["f"],
                                gf["o"], gb["o"], gf["g"], gb["g"]], axis=-1)

    wih_big = interleave(gf_ih, gb_ih)                 # [E, 8*hd]
    b_big = interleave(gf_b, gb_b)                     # [1, 8*hd]

    zf = jnp.zeros((hd, hd), jnp.float32)

    def blkcol(cf, cb):       # [2hd, 2hd]: fwd rows feed *_f col, bwd rows feed *_b col
        top = jnp.concatenate([cf, zf], axis=-1)
        bot = jnp.concatenate([zf, cb], axis=-1)
        return jnp.concatenate([top, bot], axis=0)

    whh_big = jnp.concatenate([blkcol(gf_hh["i"], gb_hh["i"]),
                               blkcol(gf_hh["f"], gb_hh["f"]),
                               blkcol(gf_hh["o"], gb_hh["o"]),
                               blkcol(gf_hh["g"], gb_hh["g"])], axis=-1)   # [2hd, 8hd]

    # Fold embedding + input projection + biases: XG = onehot @ EWB
    ewb = jnp.dot(p["word_embed"], wih_big,
                  precision=jax.lax.Precision.HIGHEST) + b_big            # [WTI, 8hd]

    col = jnp.arange(8 * hd)
    # Single-tanh trick: sigmoid(x) = 0.5*tanh(x/2)+0.5.  Pre-scale the i/f/o
    # gate columns (first 6*hd) of BOTH the input path and the recurrent path
    # by 0.5 so the kernel evaluates one tanh over all 128 gate lanes per step.
    halve = jnp.where(col < 6 * hd, 0.5, 1.0)[None, :]
    ewb = ewb * halve
    whh_big = whh_big * halve

    # Doubled, direction-masked table: rows [0,WTI) carry only forward-gate
    # columns, rows [WTI,2*WTI) only backward-gate columns -> the per-step
    # direction select is folded into the one-hot gather matmul.
    fwd_col = ((col // hd) % 2 == 0)[None, :].astype(jnp.float32)
    ewb2 = jnp.concatenate([ewb * fwd_col, ewb * (1.0 - fwd_col)], axis=0)  # [2*WTI, 8hd]

    # Lane-dense (padded) output projection
    w_out_p = jnp.zeros((HIDDEN_SIZE, OUT_PAD), jnp.float32).at[:, :NUM_TAGS].set(p["w_out"])
    b_out_p = jnp.zeros((1, OUT_PAD), jnp.float32).at[:, :NUM_TAGS].set(p["b_out"])

    return {"ewb2": ewb2, "whh": whh_big, "w_out": w_out_p, "b_out": b_out_p}


# ------------------------------- wrapper -------------------------------------
@jax.jit
def ner_rnn_forward(xc, xw, mask, fused_params):
    # TODO(synk): char-level sub-embedding (char-CNN/RNN of `embed`) omitted;
    #             word-lookup embedding of size EMBED_SIZE only.
    del xc
    xw = xw.astype(jnp.int32)
    mask = mask.astype(jnp.float32)

    # forward / backward word ids, row r = b*T + t (batch-major)
    idx_f = xw.reshape(B * T, 1)
    idx_b = (WTI_SIZE + xw[:, ::-1]).reshape(B * T, 1)

    # direction-selected mask, hoisted out of the recurrence:
    #   cols [0:hd]  -> mask[b, t]      (forward direction)
    #   cols [hd:2hd]-> mask[b, T-1-t]  (backward direction)
    m_f = jnp.broadcast_to(mask[:, :, None], (B, T, HD))
    m_b = jnp.broadcast_to(mask[:, ::-1, None], (B, T, HD))
    m_sel = jnp.concatenate([m_f, m_b], axis=-1)               # [B, T, 2*HD]
    m_out = mask.reshape(B * T, 1)                             # output mask

    vmem = pl.BlockSpec(memory_space=pltpu.MemorySpace.VMEM)
    out = pl.pallas_call(
        bilstm_fused_kernel,
        out_shape=jax.ShapeDtypeStruct((B * T, OUT_PAD), jnp.float32),
        in_specs=[vmem] * 8,
        out_specs=vmem,
        scratch_shapes=[pltpu.VMEM((B, T, 2 * HD), jnp.float32)],
    )(idx_f, idx_b, m_sel, m_out,
      fused_params["ewb2"], fused_params["whh"],
      fused_params["w_out"], fused_params["b_out"])

    return out.reshape(B, T, OUT_PAD)[:, :, :NUM_TAGS]         # [B, T, num_tags]


# ------------------------ pure-JAX reference ---------------------------------
def _lstm_step_ref(x_t, m_t, h_prev, c_prev, w_ih, w_hh, bias, hd):
    # PyTorch gate order: i, f, g, o
    gates = x_t @ w_ih + h_prev @ w_hh + bias
    i = jax.nn.sigmoid(gates[:, 0 * hd:1 * hd])
    f = jax.nn.sigmoid(gates[:, 1 * hd:2 * hd])
    g = jnp.tanh(gates[:, 2 * hd:3 * hd])
    o = jax.nn.sigmoid(gates[:, 3 * hd:4 * hd])
    c_new = f * c_prev + i * g
    h_new = o * jnp.tanh(c_new)
    h_new = m_t * h_new + (1.0 - m_t) * h_prev
    c_new = m_t * c_new + (1.0 - m_t) * c_prev
    return h_new, c_new


def ref_forward(xw, mask, p):
    x = jnp.take(p["word_embed"], xw, axis=0)          # [B, T, E]
    m = mask[:, :, None].astype(jnp.float32)           # [B, T, 1]

    def run_dir(w_ih, w_hh, b, reverse):
        h = jnp.zeros((B, HD), jnp.float32)
        c = jnp.zeros((B, HD), jnp.float32)
        outs = [None] * T
        order = range(T - 1, -1, -1) if reverse else range(T)
        for t in order:
            h, c = _lstm_step_ref(x[:, t, :], m[:, t, :], h, c, w_ih, w_hh, b, HD)
            outs[t] = h
        return jnp.stack(outs, axis=1)                 # [B, T, HD]

    hf = run_dir(p["wih_f"], p["whh_f"], p["b_f"], reverse=False)
    hb = run_dir(p["wih_b"], p["whh_b"], p["b_b"], reverse=True)
    hs = jnp.concatenate([hf, hb], axis=-1)            # [B, T, HIDDEN]
    logits = hs @ p["w_out"] + p["b_out"][0]
    return logits * m


# ------------------------------- main ----------------------------------------
if __name__ == "__main__":
    key = jax.random.PRNGKey(0)
    k_p, k_c, k_w = jax.random.split(key, 3)

    params = make_params(k_p)
    fused = prepare_fused_params(params)

    xc = jax.random.randint(k_c, (B, T, CHAR_LEN), 0, CTI_SIZE)   # unused (TODO above)
    xw = jax.random.randint(k_w, (B, T), 0, WTI_SIZE)
    lengths = jnp.array([T, 5], dtype=jnp.int32)                  # sorted desc (enforce_sorted)
    mask = (jnp.arange(T)[None, :] < lengths[:, None]).astype(jnp.float32)  # [B, T]

    out = jax.block_until_ready(ner_rnn_forward(xc, xw, mask, fused))
    ref = jax.block_until_ready(ref_forward(xw, mask, params))

    assert out.shape == (B, T, NUM_TAGS), out.shape
    max_err = float(jnp.max(jnp.abs(out - ref)))
    assert max_err < 5e-4, f"max_err={max_err}"

    print("KERNEL_OK")
</pallas_src>

<mosaic_0001>
module attributes {stable_mosaic.version = 11 : i64} {
  func.func @bilstm_fused_kernel(%arg0: memref<16x1xi32, #tpu.memory_space<vmem>>, %arg1: memref<16x1xi32, #tpu.memory_space<vmem>>, %arg2: memref<2x8x32xf32, #tpu.memory_space<vmem>>, %arg3: memref<16x1xf32, #tpu.memory_space<vmem>>, %arg4: memref<128x128xf32, #tpu.memory_space<vmem>>, %arg5: memref<32x128xf32, #tpu.memory_space<vmem>>, %arg6: memref<32x128xf32, #tpu.memory_space<vmem>>, %arg7: memref<1x128xf32, #tpu.memory_space<vmem>>, %arg8: memref<16x128xf32, #tpu.memory_space<vmem>>, %arg9: memref<2x8x32xf32, #tpu.memory_space<vmem>>) attributes {dimension_semantics = [], scalar_prefetch = 0 : i64, scratch_operands = 1 : i64, tpu.core_type = #tpu.core_type<tc>} {
    %0 = tpu.iota {dimensions = array<i32: 1>} : vector<16x128xi32>
    %c0 = arith.constant 0 : index
    %c0_0 = arith.constant 0 : index
    %1 = vector.load %arg0[%c0, %c0_0] : memref<16x1xi32, #tpu.memory_space<vmem>>, vector<16x1xi32>
    %2 = vector.broadcast %1 : vector<16x1xi32> to vector<16x128xi32>
    %3 = arith.cmpi eq, %0, %2 : vector<16x128xi32>
    %c0_1 = arith.constant 0 : index
    %c0_2 = arith.constant 0 : index
    %4 = vector.load %arg1[%c0_1, %c0_2] : memref<16x1xi32, #tpu.memory_space<vmem>>, vector<16x1xi32>
    %5 = vector.broadcast %4 : vector<16x1xi32> to vector<16x128xi32>
    %6 = arith.cmpi eq, %0, %5 : vector<16x128xi32>
    %7 = arith.ori %3, %6 : vector<16x128xi1>
    %8 = arith.extui %7 : vector<16x128xi1> to vector<16x128xi32>
    %9 = arith.sitofp %8 : vector<16x128xi32> to vector<16x128xf32>
    %c0_3 = arith.constant 0 : index
    %c0_4 = arith.constant 0 : index
    %10 = vector.load %arg4[%c0_3, %c0_4] : memref<128x128xf32, #tpu.memory_space<vmem>>, vector<128x128xf32>
    %cst = arith.constant dense<0.000000e+00> : vector<16x128xf32>
    %11 = tpu.matmul %9, %10, %cst {dimension_numbers = #tpu.dot_dimension_numbers<[1], [0], [0], [1], [0, 0, 1, 1], [], []>} : vector<16x128xf32>, vector<128x128xf32>, vector<16x128xf32> -> vector<16x128xf32>
    %12 = vector.shape_cast %11 : vector<16x128xf32> to vector<2x8x128xf32>
    %c0_5 = arith.constant 0 : index
    %c0_6 = arith.constant 0 : index
    %13 = vector.load %arg5[%c0_5, %c0_6] : memref<32x128xf32, #tpu.memory_space<vmem>>, vector<32x128xf32>
    %c0_7 = arith.constant 0 : index
    %c0_8 = arith.constant 0 : index
    %c0_9 = arith.constant 0 : index
    %14 = vector.load %arg2[%c0_7, %c0_8, %c0_9] : memref<2x8x32xf32, #tpu.memory_space<vmem>>, vector<2x8x32xf32>
    %cst_10 = arith.constant 0.000000e+00 : f32
    %15 = vector.broadcast %cst_10 : f32 to vector<2x32xf32>
    %cst_11 = arith.constant 0.000000e+00 : f32
    %16 = vector.broadcast %cst_11 : f32 to vector<2x32xf32>
    %17 = vector.extract_strided_slice %12 {offsets = [0, 0, 0], sizes = [2, 1, 128], strides = [1, 1, 1]} : vector<2x8x128xf32> to vector<2x1x128xf32>
    %18 = vector.shape_cast %17 : vector<2x1x128xf32> to vector<2x128xf32>
    %cst_12 = arith.constant dense<0.000000e+00> : vector<2x128xf32>
    %19 = tpu.matmul %15, %13, %cst_12 {dimension_numbers = #tpu.dot_dimension_numbers<[1], [0], [0], [1], [0, 0, 1, 1], [], []>} : vector<2x32xf32>, vector<32x128xf32>, vector<2x128xf32> -> vector<2x128xf32>
    %20 = arith.addf %18, %19 : vector<2x128xf32>
    %21 = math.tanh %20 : vector<2x128xf32>
    %22 = vector.extract_strided_slice %21 {offsets = [0, 0], sizes = [2, 96], strides = [1, 1]} : vector<2x128xf32> to vector<2x96xf32>
    %cst_13 = arith.constant 5.000000e-01 : f32
    %23 = vector.broadcast %cst_13 : f32 to vector<2x96xf32>
    %24 = arith.mulf %23, %22 : vector<2x96xf32>
    %cst_14 = arith.constant 5.000000e-01 : f32
    %25 = vector.broadcast %cst_14 : f32 to vector<2x96xf32>
    %26 = arith.addf %24, %25 : vector<2x96xf32>
    %27 = vector.extract_strided_slice %26 {offsets = [0, 0], sizes = [2, 32], strides = [1, 1]} : vector<2x96xf32> to vector<2x32xf32>
    %28 = vector.extract_strided_slice %26 {offsets = [0, 32], sizes = [2, 32], strides = [1, 1]} : vector<2x96xf32> to vector<2x32xf32>
    %29 = vector.extract_strided_slice %26 {offsets = [0, 64], sizes = [2, 32], strides = [1, 1]} : vector<2x96xf32> to vector<2x32xf32>
    %30 = vector.extract_strided_slice %21 {offsets = [0, 96], sizes = [2, 32], strides = [1, 1]} : vector<2x128xf32> to vector<2x32xf32>
    %31 = arith.mulf %28, %16 : vector<2x32xf32>
    %32 = arith.mulf %27, %30 : vector<2x32xf32>
    %33 = arith.addf %31, %32 : vector<2x32xf32>
    %34 = math.tanh %33 : vector<2x32xf32>
    %35 = arith.mulf %29, %34 : vector<2x32xf32>
    %36 = vector.extract_strided_slice %14 {offsets = [0, 0, 0], sizes = [2, 1, 32], strides = [1, 1, 1]} : vector<2x8x32xf32> to vector<2x1x32xf32>
    %37 = vector.shape_cast %36 : vector<2x1x32xf32> to vector<2x32xf32>
    %38 = arith.mulf %37, %35 : vector<2x32xf32>
    %cst_15 = arith.constant 1.000000e+00 : f32
    %39 = vector.broadcast %cst_15 : f32 to vector<2x32xf32>
    %40 = arith.subf %39, %37 : vector<2x32xf32>
    %41 = arith.mulf %40, %15 : vector<2x32xf32>
    %42 = arith.addf %38, %41 : vector<2x32xf32>
    %43 = arith.mulf %37, %33 : vector<2x32xf32>
    %cst_16 = arith.constant 1.000000e+00 : f32
    %44 = vector.broadcast %cst_16 : f32 to vector<2x32xf32>
    %45 = arith.subf %44, %37 : vector<2x32xf32>
    %46 = arith.mulf %45, %16 : vector<2x32xf32>
    %47 = arith.addf %43, %46 : vector<2x32xf32>
    %48 = vector.extract_strided_slice %42 {offsets = [0, 0], sizes = [2, 16], strides = [1, 1]} : vector<2x32xf32> to vector<2x16xf32>
    %c0_17 = arith.constant 0 : index
    %c0_18 = arith.constant 0 : index
    %c0_19 = arith.constant 0 : index
    %49 = vector.load %arg9[%c0_17, %c0_18, %c0_19] : memref<2x8x32xf32, #tpu.memory_space<vmem>>, vector<2x1x16xf32>
    %50 = vector.shape_cast %49 : vector<2x1x16xf32> to vector<2x16xf32>
    %51 = vector.shape_cast %48 : vector<2x16xf32> to vector<2x1x16xf32>
    tpu.vector_store %arg9[%c0_17, %c0_18, %c0_19], %51 {strides = array<i32>} : memref<2x8x32xf32, #tpu.memory_space<vmem>>, vector<2x1x16xf32>,
    %52 = vector.extract_strided_slice %42 {offsets = [0, 16], sizes = [2, 16], strides = [1, 1]} : vector<2x32xf32> to vector<2x16xf32>
    %c0_20 = arith.constant 0 : index
    %c7 = arith.constant 7 : index
    %c16 = arith.constant 16 : index
    %53 = vector.load %arg9[%c0_20, %c7, %c16] : memref<2x8x32xf32, #tpu.memory_space<vmem>>, vector<2x1x16xf32>
    %54 = vector.shape_cast %53 : vector<2x1x16xf32> to vector<2x16xf32>
    %55 = vector.shape_cast %52 : vector<2x16xf32> to vector<2x1x16xf32>
    tpu.vector_store %arg9[%c0_20, %c7, %c16], %55 {strides = array<i32>} : memref<2x8x32xf32, #tpu.memory_space<vmem>>, vector<2x1x16xf32>,
    %56 = vector.extract_strided_slice %12 {offsets = [0, 1, 0], sizes = [2, 1, 128], strides = [1, 1, 1]} : vector<2x8x128xf32> to vector<2x1x128xf32>
    %57 = vector.shape_cast %56 : vector<2x1x128xf32> to vector<2x128xf32>
    %cst_21 = arith.constant dense<0.000000e+00> : vector<2x128xf32>
    %58 = tpu.matmul %42, %13, %cst_21 {dimension_numbers = #tpu.dot_dimension_numbers<[1], [0], [0], [1], [0, 0, 1, 1], [], []>} : vector<2x32xf32>, vector<32x128xf32>, vector<2x128xf32> -> vector<2x128xf32>
    %59 = arith.addf %57, %58 : vector<2x128xf32>
    %60 = math.tanh %59 : vector<2x128xf32>
    %61 = vector.extract_strided_slice %60 {offsets = [0, 0], sizes = [2, 96], strides = [1, 1]} : vector<2x128xf32> to vector<2x96xf32>
    %cst_22 = arith.constant 5.000000e-01 : f32
    %62 = vector.broadcast %cst_22 : f32 to vector<2x96xf32>
    %63 = arith.mulf %62, %61 : vector<2x96xf32>
    %cst_23 = arith.constant 5.000000e-01 : f32
    %64 = vector.broadcast %cst_23 : f32 to vector<2x96xf32>
    %65 = arith.addf %63, %64 : vector<2x96xf32>
    %66 = vector.extract_strided_slice %65 {offsets = [0, 0], sizes = [2, 32], strides = [1, 1]} : vector<2x96xf32> to vector<2x32xf32>
    %67 = vector.extract_strided_slice %65 {offsets = [0, 32], sizes = [2, 32], strides = [1, 1]} : vector<2x96xf32> to vector<2x32xf32>
    %68 = vector.extract_strided_slice %65 {offsets = [0, 64], sizes = [2, 32], strides = [1, 1]} : vector<2x96xf32> to vector<2x32xf32>
    %69 = vector.extract_strided_slice %60 {offsets = [0, 96], sizes = [2, 32], strides = [1, 1]} : vector<2x128xf32> to vector<2x32xf32>
    %70 = arith.mulf %67, %47 : vector<2x32xf32>
    %71 = arith.mulf %66, %69 : vector<2x32xf32>
    %72 = arith.addf %70, %71 : vector<2x32xf32>
    %73 = math.tanh %72 : vector<2x32xf32>
    %74 = arith.mulf %68, %73 : vector<2x32xf32>
    %75 = vector.extract_strided_slice %14 {offsets = [0, 1, 0], sizes = [2, 1, 32], strides = [1, 1, 1]} : vector<2x8x32xf32> to vector<2x1x32xf32>
    %76 = vector.shape_cast %75 : vector<2x1x32xf32> to vector<2x32xf32>
    %77 = arith.mulf %76, %74 : vector<2x32xf32>
    %cst_24 = arith.constant 1.000000e+00 : f32
    %78 = vector.broadcast %cst_24 : f32 to vector<2x32xf32>
    %79 = arith.subf %78, %76 : vector<2x32xf32>
    %80 = arith.mulf %79, %42 : vector<2x32xf32>
    %81 = arith.addf %77, %80 : vector<2x32xf32>
    %82 = arith.mulf %76, %72 : vector<2x32xf32>
    %cst_25 = arith.constant 1.000000e+00 : f32
    %83 = vector.broadcast %cst_25 : f32 to vector<2x32xf32>
    %84 = arith.subf %83, %76 : vector<2x32xf32>
    %85 = arith.mulf %84, %47 : vector<2x32xf32>
    %86 = arith.addf %82, %85 : vector<2x32xf32>
    %87 = vector.extract_strided_slice %81 {offsets = [0, 0], sizes = [2, 16], strides = [1, 1]} : vector<2x32xf32> to vector<2x16xf32>
    %c0_26 = arith.constant 0 : index
    %c1 = arith.constant 1 : index
    %c0_27 = arith.constant 0 : index
    %88 = vector.load %arg9[%c0_26, %c1, %c0_27] : memref<2x8x32xf32, #tpu.memory_space<vmem>>, vector<2x1x16xf32>
    %89 = vector.shape_cast %88 : vector<2x1x16xf32> to vector<2x16xf32>
    %90 = vector.shape_cast %87 : vector<2x16xf32> to vector<2x1x16xf32>
    tpu.vector_store %arg9[%c0_26, %c1, %c0_27], %90 {strides = array<i32>} : memref<2x8x32xf32, #tpu.memory_space<vmem>>, vector<2x1x16xf32>,
    %91 = vector.extract_strided_slice %81 {offsets = [0, 16], sizes = [2, 16], strides = [1, 1]} : vector<2x32xf32> to vector<2x16xf32>
    %c0_28 = arith.constant 0 : index
    %c6 = arith.constant 6 : index
    %c16_29 = arith.constant 16 : index
    %92 = vector.load %arg9[%c0_28, %c6, %c16_29] : memref<2x8x32xf32, #tpu.memory_space<vmem>>, vector<2x1x16xf32>
    %93 = vector.shape_cast %92 : vector<2x1x16xf32> to vector<2x16xf32>
    %94 = vector.shape_cast %91 : vector<2x16xf32> to vector<2x1x16xf32>
    tpu.vector_store %arg9[%c0_28, %c6, %c16_29], %94 {strides = array<i32>} : memref<2x8x32xf32, #tpu.memory_space<vmem>>, vector<2x1x16xf32>,
    %95 = vector.extract_strided_slice %12 {offsets = [0, 2, 0], sizes = [2, 1, 128], strides = [1, 1, 1]} : vector<2x8x128xf32> to vector<2x1x128xf32>
    %96 = vector.shape_cast %95 : vector<2x1x128xf32> to vector<2x128xf32>
    %cst_30 = arith.constant dense<0.000000e+00> : vector<2x128xf32>
    %97 = tpu.matmul %81, %13, %cst_30 {dimension_numbers = #tpu.dot_dimension_numbers<[1], [0], [0], [1], [0, 0, 1, 1], [], []>} : vector<2x32xf32>, vector<32x128xf32>, vector<2x128xf32> -> vector<2x128xf32>
    %98 = arith.addf %96, %97 : vector<2x128xf32>
    %99 = math.tanh %98 : vector<2x128xf32>
    %100 = vector.extract_strided_slice %99 {offsets = [0, 0], sizes = [2, 96], strides = [1, 1]} : vector<2x128xf32> to vector<2x96xf32>
    %cst_31 = arith.constant 5.000000e-01 : f32
    %101 = vector.broadcast %cst_31 : f32 to vector<2x96xf32>
    %102 = arith.mulf %101, %100 : vector<2x96xf32>
    %cst_32 = arith.constant 5.000000e-01 : f32
    %103 = vector.broadcast %cst_32 : f32 to vector<2x96xf32>
    %104 = arith.addf %102, %103 : vector<2x96xf32>
    %105 = vector.extract_strided_slice %104 {offsets = [0, 0], sizes = [2, 32], strides = [1, 1]} : vector<2x96xf32> to vector<2x32xf32>
    %106 = vector.extract_strided_slice %104 {offsets = [0, 32], sizes = [2, 32], strides = [1, 1]} : vector<2x96xf32> to vector<2x32xf32>
    %107 = vector.extract_strided_slice %104 {offsets = [0, 64], sizes = [2, 32], strides = [1, 1]} : vector<2x96xf32> to vector<2x32xf32>
    %108 = vector.extract_strided_slice %99 {offsets = [0, 96], sizes = [2, 32], strides = [1, 1]} : vector<2x128xf32> to vector<2x32xf32>
    %109 = arith.mulf %106, %86 : vector<2x32xf32>
    %110 = arith.mulf %105, %108 : vector<2x32xf32>
    %111 = arith.addf %109, %110 : vector<2x32xf32>
    %112 = math.tanh %111 : vector<2x32xf32>
    %113 = arith.mulf %107, %112 : vector<2x32xf32>
    %114 = vector.extract_strided_slice %14 {offsets = [0, 2, 0], sizes = [2, 1, 32], strides = [1, 1, 1]} : vector<2x8x32xf32> to vector<2x1x32xf32>
    %115 = vector.shape_cast %114 : vector<2x1x32xf32> to vector<2x32xf32>
    %116 = arith.mulf %115, %113 : vector<2x32xf32>
    %cst_33 = arith.constant 1.000000e+00 : f32
    %117 = vector.broadcast %cst_33 : f32 to vector<2x32xf32>
    %118 = arith.subf %117, %115 : vector<2x32xf32>
    %119 = arith.mulf %118, %81 : vector<2x32xf32>
    %120 = arith.addf %116, %119 : vector<2x32xf32>
    %121 = arith.mulf %115, %111 : vector<2x32xf32>
    %cst_34 = arith.constant 1.000000e+00 : f32
    %122 = vector.broadcast %cst_34 : f32 to vector<2x32xf32>
    %123 = arith.subf %122, %115 : vector<2x32xf32>
    %124 = arith.mulf %123, %86 : vector<2x32xf32>
    %125 = arith.addf %121, %124 : vector<2x32xf32>
    %126 = vector.extract_strided_slice %120 {offsets = [0, 0], sizes = [2, 16], strides = [1, 1]} : vector<2x32xf32> to vector<2x16xf32>
    %c0_35 = arith.constant 0 : index
    %c2 = arith.constant 2 : index
    %c0_36 = arith.constant 0 : index
    %127 = vector.load %arg9[%c0_35, %c2, %c0_36] : memref<2x8x32xf32, #tpu.memory_space<vmem>>, vector<2x1x16xf32>
    %128 = vector.shape_cast %127 : vector<2x1x16xf32> to vector<2x16xf32>
    %129 = vector.shape_cast %126 : vector<2x16xf32> to vector<2x1x16xf32>
    tpu.vector_store %arg9[%c0_35, %c2, %c0_36], %129 {strides = array<i32>} : memref<2x8x32xf32, #tpu.memory_space<vmem>>, vector<2x1x16xf32>,
    %130 = vector.extract_strided_slice %120 {offsets = [0, 16], sizes = [2, 16], strides = [1, 1]} : vector<2x32xf32> to vector<2x16xf32>
    %c0_37 = arith.constant 0 : index
    %c5 = arith.constant 5 : index
    %c16_38 = arith.constant 16 : index
    %131 = vector.load %arg9[%c0_37, %c5, %c16_38] : memref<2x8x32xf32, #tpu.memory_space<vmem>>, vector<2x1x16xf32>
    %132 = vector.shape_cast %131 : vector<2x1x16xf32> to vector<2x16xf32>
    %133 = vector.shape_cast %130 : vector<2x16xf32> to vector<2x1x16xf32>
    tpu.vector_store %arg9[%c0_37, %c5, %c16_38], %133 {strides = array<i32>} : memref<2x8x32xf32, #tpu.memory_space<vmem>>, vector<2x1x16xf32>,
    %134 = vector.extract_strided_slice %12 {offsets = [0, 3, 0], sizes = [2, 1, 128], strides = [1, 1, 1]} : vector<2x8x128xf32> to vector<2x1x128xf32>
    %135 = vector.shape_cast %134 : vector<2x1x128xf32> to vector<2x128xf32>
    %cst_39 = arith.constant dense<0.000000e+00> : vector<2x128xf32>
    %136 = tpu.matmul %120, %13, %cst_39 {dimension_numbers = #tpu.dot_dimension_numbers<[1], [0], [0], [1], [0, 0, 1, 1], [], []>} : vector<2x32xf32>, vector<32x128xf32>, vector<2x128xf32> -> vector<2x128xf32>
    %137 = arith.addf %135, %136 : vector<2x128xf32>
    %138 = math.tanh %137 : vector<2x128xf32>
    %139 = vector.extract_strided_slice %138 {offsets = [0, 0], sizes = [2, 96], strides = [1, 1]} : vector<2x128xf32> to vector<2x96xf32>
    %cst_40 = arith.constant 5.000000e-01 : f32
    %140 = vector.broadcast %cst_40 : f32 to vector<2x96xf32>
    %141 = arith.mulf %140, %139 : vector<2x96xf32>
    %cst_41 = arith.constant 5.000000e-01 : f32
    %142 = vector.broadcast %cst_41 : f32 to vector<2x96xf32>
    %143 = arith.addf %141, %142 : vector<2x96xf32>
    %144 = vector.extract_strided_slice %143 {offsets = [0, 0], sizes = [2, 32], strides = [1, 1]} : vector<2x96xf32> to vector<2x32xf32>
    %145 = vector.extract_strided_slice %143 {offsets = [0, 32], sizes = [2, 32], strides = [1, 1]} : vector<2x96xf32> to vector<2x32xf32>
    %146 = vector.extract_strided_slice %143 {offsets = [0, 64], sizes = [2, 32], strides = [1, 1]} : vector<2x96xf32> to vector<2x32xf32>
    %147 = vector.extract_strided_slice %138 {offsets = [0, 96], sizes = [2, 32], strides = [1, 1]} : vector<2x128xf32> to vector<2x32xf32>
    %148 = arith.mulf %145, %125 : vector<2x32xf32>
    %149 = arith.mulf %144, %147 : vector<2x32xf32>
    %150 = arith.addf %148, %149 : vector<2x32xf32>
    %151 = math.tanh %150 : vector<2x32xf32>
    %152 = arith.mulf %146, %151 : vector<2x32xf32>
    %153 = vector.extract_strided_slice %14 {offsets = [0, 3, 0], sizes = [2, 1, 32], strides = [1, 1, 1]} : vector<2x8x32xf32> to vector<2x1x32xf32>
    %154 = vector.shape_cast %153 : vector<2x1x32xf32> to vector<2x32xf32>
    %155 = arith.mulf %154, %152 : vector<2x32xf32>
    %cst_42 = arith.constant 1.000000e+00 : f32
    %156 = vector.broadcast %cst_42 : f32 to vector<2x32xf32>
    %157 = arith.subf %156, %154 : vector<2x32xf32>
    %158 = arith.mulf %157, %120 : vector<2x32xf32>
    %159 = arith.addf %155, %158 : vector<2x32xf32>
    %160 = arith.mulf %154, %150 : vector<2x32xf32>
    %cst_43 = arith.constant 1.000000e+00 : f32
    %161 = vector.broadcast %cst_43 : f32 to vector<2x32xf32>
    %162 = arith.subf %161, %154 : vector<2x32xf32>
    %163 = arith.mulf %162, %125 : vector<2x32xf32>
    %164 = arith.addf %160, %163 : vector<2x32xf32>
    %165 = vector.extract_strided_slice %159 {offsets = [0, 0], sizes = [2, 16], strides = [1, 1]} : vector<2x32xf32> to vector<2x16xf32>
    %c0_44 = arith.constant 0 : index
    %c3 = arith.constant 3 : index
    %c0_45 = arith.constant 0 : index
    %166 = vector.load %arg9[%c0_44, %c3, %c0_45] : memref<2x8x32xf32, #tpu.memory_space<vmem>>, vector<2x1x16xf32>
    %167 = vector.shape_cast %166 : vector<2x1x16xf32> to vector<2x16xf32>
    %168 = vector.shape_cast %165 : vector<2x16xf32> to vector<2x1x16xf32>
    tpu.vector_store %arg9[%c0_44, %c3, %c0_45], %168 {strides = array<i32>} : memref<2x8x32xf32, #tpu.memory_space<vmem>>, vector<2x1x16xf32>,
    %169 = vector.extract_strided_slice %159 {offsets = [0, 16], sizes = [2, 16], strides = [1, 1]} : vector<2x32xf32> to vector<2x16xf32>
    %c0_46 = arith.constant 0 : index
    %c4 = arith.constant 4 : index
    %c16_47 = arith.constant 16 : index
    %170 = vector.load %arg9[%c0_46, %c4, %c16_47] : memref<2x8x32xf32, #tpu.memory_space<vmem>>, vector<2x1x16xf32>
    %171 = vector.shape_cast %170 : vector<2x1x16xf32> to vector<2x16xf32>
    %172 = vector.shape_cast %169 : vector<2x16xf32> to vector<2x1x16xf32>
    tpu.vector_store %arg9[%c0_46, %c4, %c16_47], %172 {strides = array<i32>} : memref<2x8x32xf32, #tpu.memory_space<vmem>>, vector<2x1x16xf32>,
    %173 = vector.extract_strided_slice %12 {offsets = [0, 4, 0], sizes = [2, 1, 128], strides = [1, 1, 1]} : vector<2x8x128xf32> to vector<2x1x128xf32>
    %174 = vector.shape_cast %173 : vector<2x1x128xf32> to vector<2x128xf32>
    %cst_48 = arith.constant dense<0.000000e+00> : vector<2x128xf32>
    %175 = tpu.matmul %159, %13, %cst_48 {dimension_numbers = #tpu.dot_dimension_numbers<[1], [0], [0], [1], [0, 0, 1, 1], [], []>} : vector<2x32xf32>, vector<32x128xf32>, vector<2x128xf32> -> vector<2x128xf32>
    %176 = arith.addf %174, %175 : vector<2x128xf32>
    %177 = math.tanh %176 : vector<2x128xf32>
    %178 = vector.extract_strided_slice %177 {offsets = [0, 0], sizes = [2, 96], strides = [1, 1]} : vector<2x128xf32> to vector<2x96xf32>
    %cst_49 = arith.constant 5.000000e-01 : f32
    %179 = vector.broadcast %cst_49 : f32 to vector<2x96xf32>
    %180 = arith.mulf %179, %178 : vector<2x96xf32>
    %cst_50 = arith.constant 5.000000e-01 : f32
    %181 = vector.broadcast %cst_50 : f32 to vector<2x96xf32>
    %182 = arith.addf %180, %181 : vector<2x96xf32>
    %183 = vector.extract_strided_slice %182 {offsets = [0, 0], sizes = [2, 32], strides = [1, 1]} : vector<2x96xf32> to vector<2x32xf32>
    %184 = vector.extract_strided_slice %182 {offsets = [0, 32], sizes = [2, 32], strides = [1, 1]} : vector<2x96xf32> to vector<2x32xf32>
    %185 = vector.extract_strided_slice %182 {offsets = [0, 64], sizes = [2, 32], strides = [1, 1]} : vector<2x96xf32> to vector<2x32xf32>
    %186 = vector.extract_strided_slice %177 {offsets = [0, 96], sizes = [2, 32], strides = [1, 1]} : vector<2x128xf32> to vector<2x32xf32>
    %187 = arith.mulf %184, %164 : vector<2x32xf32>
    %188 = arith.mulf %183, %186 : vector<2x32xf32>
    %189 = arith.addf %187, %188 : vector<2x32xf32>
    %190 = math.tanh %189 : vector<2x32xf32>
    %191 = arith.mulf %185, %190 : vector<2x32xf32>
    %192 = vector.extract_strided_slice %14 {offsets = [0, 4, 0], sizes = [2, 1, 32], strides = [1, 1, 1]} : vector<2x8x32xf32> to vector<2x1x32xf32>
    %193 = vector.shape_cast %192 : vector<2x1x32xf32> to vector<2x32xf32>
    %194 = arith.mulf %193, %191 : vector<2x32xf32>
    %cst_51 = arith.constant 1.000000e+00 : f32
    %195 = vector.broadcast %cst_51 : f32 to vector<2x32xf32>
    %196 = arith.subf %195, %193 : vector<2x32xf32>
    %197 = arith.mulf %196, %159 : vector<2x32xf32>
    %198 = arith.addf %194, %197 : vector<2x32xf32>
    %199 = arith.mulf %193, %189 : vector<2x32xf32>
    %cst_52 = arith.constant 1.000000e+00 : f32
    %200 = vector.broadcast %cst_52 : f32 to vector<2x32xf32>
    %201 = arith.subf %200, %193 : vector<2x32xf32>
    %202 = arith.mulf %201, %164 : vector<2x32xf32>
    %203 = arith.addf %199, %202 : vector<2x32xf32>
    %204 = vector.extract_strided_slice %198 {offsets = [0, 0], sizes = [2, 16], strides = [1, 1]} : vector<2x32xf32> to vector<2x16xf32>
    %c0_53 = arith.constant 0 : index
    %c4_54 = arith.constant 4 : index
    %c0_55 = arith.constant 0 : index
    %205 = vector.load %arg9[%c0_53, %c4_54, %c0_55] : memref<2x8x32xf32, #tpu.memory_space<vmem>>, vector<2x1x16xf32>
    %206 = vector.shape_cast %205 : vector<2x1x16xf32> to vector<2x16xf32>
    %207 = vector.shape_cast %204 : vector<2x16xf32> to vector<2x1x16xf32>
    tpu.vector_store %arg9[%c0_53, %c4_54, %c0_55], %207 {strides = array<i32>} : memref<2x8x32xf32, #tpu.memory_space<vmem>>, vector<2x1x16xf32>,
    %208 = vector.extract_strided_slice %198 {offsets = [0, 16], sizes = [2, 16], strides = [1, 1]} : vector<2x32xf32> to vector<2x16xf32>
    %c0_56 = arith.constant 0 : index
    %c3_57 = arith.constant 3 : index
    %c16_58 = arith.constant 16 : index
    %209 = vector.load %arg9[%c0_56, %c3_57, %c16_58] : memref<2x8x32xf32, #tpu.memory_space<vmem>>, vector<2x1x16xf32>
    %210 = vector.shape_cast %209 : vector<2x1x16xf32> to vector<2x16xf32>
    %211 = vector.shape_cast %208 : vector<2x16xf32> to vector<2x1x16xf32>
    tpu.vector_store %arg9[%c0_56, %c3_57, %c16_58], %211 {strides = array<i32>} : memref<2x8x32xf32, #tpu.memory_space<vmem>>, vector<2x1x16xf32>,
    %212 = vector.extract_strided_slice %12 {offsets = [0, 5, 0], sizes = [2, 1, 128], strides = [1, 1, 1]} : vector<2x8x128xf32> to vector<2x1x128xf32>
    %213 = vector.shape_cast %212 : vector<2x1x128xf32> to vector<2x128xf32>
    %cst_59 = arith.constant dense<0.000000e+00> : vector<2x128xf32>
    %214 = tpu.matmul %198, %13, %cst_59 {dimension_numbers = #tpu.dot_dimension_numbers<[1], [0], [0], [1], [0, 0, 1, 1], [], []>} : vector<2x32xf32>, vector<32x128xf32>, vector<2x128xf32> -> vector<2x128xf32>
    %215 = arith.addf %213, %214 : vector<2x128xf32>
    %216 = math.tanh %215 : vector<2x128xf32>
    %217 = vector.extract_strided_slice %216 {offsets = [0, 0], sizes = [2, 96], strides = [1, 1]} : vector<2x128xf32> to vector<2x96xf32>
    %cst_60 = arith.constant 5.000000e-01 : f32
    %218 = vector.broadcast %cst_60 : f32 to vector<2x96xf32>
    %219 = arith.mulf %218, %217 : vector<2x96xf32>
    %cst_61 = arith.constant 5.000000e-01 : f32
    %220 = vector.broadcast %cst_61 : f32 to vector<2x96xf32>
    %221 = arith.addf %219, %220 : vector<2x96xf32>
    %222 = vector.extract_strided_slice %221 {offsets = [0, 0], sizes = [2, 32], strides = [1, 1]} : vector<2x96xf32> to vector<2x32xf32>
    %223 = vector.extract_strided_slice %221 {offsets = [0, 32], sizes = [2, 32], strides = [1, 1]} : vector<2x96xf32> to vector<2x32xf32>
    %224 = vector.extract_strided_slice %221 {offsets = [0, 64], sizes = [2, 32], strides = [1, 1]} : vector<2x96xf32> to vector<2x32xf32>
    %225 = vector.extract_strided_slice %216 {offsets = [0, 96], sizes = [2, 32], strides = [1, 1]} : vector<2x128xf32> to vector<2x32xf32>
    %226 = arith.mulf %223, %203 : vector<2x32xf32>
    %227 = arith.mulf %222, %225 : vector<2x32xf32>
    %228 = arith.addf %226, %227 : vector<2x32xf32>
    %229 = math.tanh %228 : vector<2x32xf32>
    %230 = arith.mulf %224, %229 : vector<2x32xf32>
    %231 = vector.extract_strided_slice %14 {offsets = [0, 5, 0], sizes = [2, 1, 32], strides = [1, 1, 1]} : vector<2x8x32xf32> to vector<2x1x32xf32>
    %232 = vector.shape_cast %231 : vector<2x1x32xf32> to vector<2x32xf32>
    %233 = arith.mulf %232, %230 : vector<2x32xf32>
    %cst_62 = arith.constant 1.000000e+00 : f32
    %234 = vector.broadcast %cst_62 : f32 to vector<2x32xf32>
    %235 = arith.subf %234, %232 : vector<2x32xf32>
    %236 = arith.mulf %235, %198 : vector<2x32xf32>
    %237 = arith.addf %233, %236 : vector<2x32xf32>
    %238 = arith.mulf %232, %228 : vector<2x32xf32>
    %cst_63 = arith.constant 1.000000e+00 : f32
    %239 = vector.broadcast %cst_63 : f32 to vector<2x32xf32>
    %240 = arith.subf %239, %232 : vector<2x32xf32>
    %241 = arith.mulf %240, %203 : vector<2x32xf32>
    %242 = arith.addf %238, %241 : vector<2x32xf32>
    %243 = vector.extract_strided_slice %237 {offsets = [0, 0], sizes = [2, 16], strides = [1, 1]} : vector<2x32xf32> to vector<2x16xf32>
    %c0_64 = arith.constant 0 : index
    %c5_65 = arith.constant 5 : index
    %c0_66 = arith.constant 0 : index
    %244 = vector.load %arg9[%c0_64, %c5_65, %c0_66] : memref<2x8x32xf32, #tpu.memory_space<vmem>>, vector<2x1x16xf32>
    %245 = vector.shape_cast %244 : vector<2x1x16xf32> to vector<2x16xf32>
    %246 = vector.shape_cast %243 : vector<2x16xf32> to vector<2x1x16xf32>
    tpu.vector_store %arg9[%c0_64, %c5_65, %c0_66], %246 {strides = array<i32>} : memref<2x8x32xf32, #tpu.memory_space<vmem>>, vector<2x1x16xf32>,
    %247 = vector.extract_strided_slice %237 {offsets = [0, 16], sizes = [2, 16], strides = [1, 1]} : vector<2x32xf32> to vector<2x16xf32>
    %c0_67 = arith.constant 0 : index
    %c2_68 = arith.constant 2 : index
    %c16_69 = arith.constant 16 : index
    %248 = vector.load %arg9[%c0_67, %c2_68, %c16_69] : memref<2x8x32xf32, #tpu.memory_space<vmem>>, vector<2x1x16xf32>
    %249 = vector.shape_cast %248 : vector<2x1x16xf32> to vector<2x16xf32>
    %250 = vector.shape_cast %247 : vector<2x16xf32> to vector<2x1x16xf32>
    tpu.vector_store %arg9[%c0_67, %c2_68, %c16_69], %250 {strides = array<i32>} : memref<2x8x32xf32, #tpu.memory_space<vmem>>, vector<2x1x16xf32>,
    %251 = vector.extract_strided_slice %12 {offsets = [0, 6, 0], sizes = [2, 1, 128], strides = [1, 1, 1]} : vector<2x8x128xf32> to vector<2x1x128xf32>
    %252 = vector.shape_cast %251 : vector<2x1x128xf32> to vector<2x128xf32>
    %cst_70 = arith.constant dense<0.000000e+00> : vector<2x128xf32>
    %253 = tpu.matmul %237, %13, %cst_70 {dimension_numbers = #tpu.dot_dimension_numbers<[1], [0], [0], [1], [0, 0, 1, 1], [], []>} : vector<2x32xf32>, vector<32x128xf32>, vector<2x128xf32> -> vector<2x128xf32>
    %254 = arith.addf %252, %253 : vector<2x128xf32>
    %255 = math.tanh %254 : vector<2x128xf32>
    %256 = vector.extract_strided_slice %255 {offsets = [0, 0], sizes = [2, 96], strides = [1, 1]} : vector<2x128xf32> to vector<2x96xf32>
    %cst_71 = arith.constant 5.000000e-01 : f32
    %257 = vector.broadcast %cst_71 : f32 to vector<2x96xf32>
    %258 = arith.mulf %257, %256 : vector<2x96xf32>
    %cst_72 = arith.constant 5.000000e-01 : f32
    %259 = vector.broadcast %cst_72 : f32 to vector<2x96xf32>
    %260 = arith.addf %258, %259 : vector<2x96xf32>
    %261 = vector.extract_strided_slice %260 {offsets = [0, 0], sizes = [2, 32], strides = [1, 1]} : vector<2x96xf32> to vector<2x32xf32>
    %262 = vector.extract_strided_slice %260 {offsets = [0, 32], sizes = [2, 32], strides = [1, 1]} : vector<2x96xf32> to vector<2x32xf32>
    %263 = vector.extract_strided_slice %260 {offsets = [0, 64], sizes = [2, 32], strides = [1, 1]} : vector<2x96xf32> to vector<2x32xf32>
    %264 = vector.extract_strided_slice %255 {offsets = [0, 96], sizes = [2, 32], strides = [1, 1]} : vector<2x128xf32> to vector<2x32xf32>
    %265 = arith.mulf %262, %242 : vector<2x32xf32>
    %266 = arith.mulf %261, %264 : vector<2x32xf32>
    %267 = arith.addf %265, %266 : vector<2x32xf32>
    %268 = math.tanh %267 : vector<2x32xf32>
    %269 = arith.mulf %263, %268 : vector<2x32xf32>
    %270 = vector.extract_strided_slice %14 {offsets = [0, 6, 0], sizes = [2, 1, 32], strides = [1, 1, 1]} : vector<2x8x32xf32> to vector<2x1x32xf32>
    %271 = vector.shape_cast %270 : vector<2x1x32xf32> to vector<2x32xf32>
    %272 = arith.mulf %271, %269 : vector<2x32xf32>
    %cst_73 = arith.constant 1.000000e+00 : f32
    %273 = vector.broadcast %cst_73 : f32 to vector<2x32xf32>
    %274 = arith.subf %273, %271 : vector<2x32xf32>
    %275 = arith.mulf %274, %237 : vector<2x32xf32>
    %276 = arith.addf %272, %275 : vector<2x32xf32>
    %277 = arith.mulf %271, %267 : vector<2x32xf32>
    %cst_74 = arith.constant 1.000000e+00 : f32
    %278 = vector.broadcast %cst_74 : f32 to vector<2x32xf32>
    %279 = arith.subf %278, %271 : vector<2x32xf32>
    %280 = arith.mulf %279, %242 : vector<2x32xf32>
    %281 = arith.addf %277, %280 : vector<2x32xf32>
    %282 = vector.extract_strided_slice %276 {offsets = [0, 0], sizes = [2, 16], strides = [1, 1]} : vector<2x32xf32> to vector<2x16xf32>
    %c0_75 = arith.constant 0 : index
    %c6_76 = arith.constant 6 : index
    %c0_77 = arith.constant 0 : index
    %283 = vector.load %arg9[%c0_75, %c6_76, %c0_77] : memref<2x8x32xf32, #tpu.memory_space<vmem>>, vector<2x1x16xf32>
    %284 = vector.shape_cast %283 : vector<2x1x16xf32> to vector<2x16xf32>
    %285 = vector.shape_cast %282 : vector<2x16xf32> to vector<2x1x16xf32>
    tpu.vector_store %arg9[%c0_75, %c6_76, %c0_77], %285 {strides = array<i32>} : memref<2x8x32xf32, #tpu.memory_space<vmem>>, vector<2x1x16xf32>,
    %286 = vector.extract_strided_slice %276 {offsets = [0, 16], sizes = [2, 16], strides = [1, 1]} : vector<2x32xf32> to vector<2x16xf32>
    %c0_78 = arith.constant 0 : index
    %c1_79 = arith.constant 1 : index
    %c16_80 = arith.constant 16 : index
    %287 = vector.load %arg9[%c0_78, %c1_79, %c16_80] : memref<2x8x32xf32, #tpu.memory_space<vmem>>, vector<2x1x16xf32>
    %288 = vector.shape_cast %287 : vector<2x1x16xf32> to vector<2x16xf32>
    %289 = vector.shape_cast %286 : vector<2x16xf32> to vector<2x1x16xf32>
    tpu.vector_store %arg9[%c0_78, %c1_79, %c16_80], %289 {strides = array<i32>} : memref<2x8x32xf32, #tpu.memory_space<vmem>>, vector<2x1x16xf32>,
    %290 = vector.extract_strided_slice %12 {offsets = [0, 7, 0], sizes = [2, 1, 128], strides = [1, 1, 1]} : vector<2x8x128xf32> to vector<2x1x128xf32>
    %291 = vector.shape_cast %290 : vector<2x1x128xf32> to vector<2x128xf32>
    %cst_81 = arith.constant dense<0.000000e+00> : vector<2x128xf32>
    %292 = tpu.matmul %276, %13, %cst_81 {dimension_numbers = #tpu.dot_dimension_numbers<[1], [0], [0], [1], [0, 0, 1, 1], [], []>} : vector<2x32xf32>, vector<32x128xf32>, vector<2x128xf32> -> vector<2x128xf32>
    %293 = arith.addf %291, %292 : vector<2x128xf32>
    %294 = math.tanh %293 : vector<2x128xf32>
    %295 = vector.extract_strided_slice %294 {offsets = [0, 0], sizes = [2, 96], strides = [1, 1]} : vector<2x128xf32> to vector<2x96xf32>
    %cst_82 = arith.constant 5.000000e-01 : f32
    %296 = vector.broadcast %cst_82 : f32 to vector<2x96xf32>
    %297 = arith.mulf %296, %295 : vector<2x96xf32>
    %cst_83 = arith.constant 5.000000e-01 : f32
    %298 = vector.broadcast %cst_83 : f32 to vector<2x96xf32>
    %299 = arith.addf %297, %298 : vector<2x96xf32>
    %300 = vector.extract_strided_slice %299 {offsets = [0, 0], sizes = [2, 32], strides = [1, 1]} : vector<2x96xf32> to vector<2x32xf32>
    %301 = vector.extract_strided_slice %299 {offsets = [0, 32], sizes = [2, 32], strides = [1, 1]} : vector<2x96xf32> to vector<2x32xf32>
    %302 = vector.extract_strided_slice %299 {offsets = [0, 64], sizes = [2, 32], strides = [1, 1]} : vector<2x96xf32> to vector<2x32xf32>
    %303 = vector.extract_strided_slice %294 {offsets = [0, 96], sizes = [2, 32], strides = [1, 1]} : vector<2x128xf32> to vector<2x32xf32>
    %304 = arith.mulf %301, %281 : vector<2x32xf32>
    %305 = arith.mulf %300, %303 : vector<2x32xf32>
    %306 = arith.addf %304, %305 : vector<2x32xf32>
    %307 = math.tanh %306 : vector<2x32xf32>
    %308 = arith.mulf %302, %307 : vector<2x32xf32>
    %309 = vector.extract_strided_slice %14 {offsets = [0, 7, 0], sizes = [2, 1, 32], strides = [1, 1, 1]} : vector<2x8x32xf32> to vector<2x1x32xf32>
    %310 = vector.shape_cast %309 : vector<2x1x32xf32> to vector<2x32xf32>
    %311 = arith.mulf %310, %308 : vector<2x32xf32>
    %cst_84 = arith.constant 1.000000e+00 : f32
    %312 = vector.broadcast %cst_84 : f32 to vector<2x32xf32>
    %313 = arith.subf %312, %310 : vector<2x32xf32>
    %314 = arith.mulf %313, %276 : vector<2x32xf32>
    %315 = arith.addf %311, %314 : vector<2x32xf32>
    %316 = vector.extract_strided_slice %315 {offsets = [0, 0], sizes = [2, 16], strides = [1, 1]} : vector<2x32xf32> to vector<2x16xf32>
    %c0_85 = arith.constant 0 : index
    %c7_86 = arith.constant 7 : index
    %c0_87 = arith.constant 0 : index
    %317 = vector.load %arg9[%c0_85, %c7_86, %c0_87] : memref<2x8x32xf32, #tpu.memory_space<vmem>>, vector<2x1x16xf32>
    %318 = vector.shape_cast %317 : vector<2x1x16xf32> to vector<2x16xf32>
    %319 = vector.shape_cast %316 : vector<2x16xf32> to vector<2x1x16xf32>
    tpu.vector_store %arg9[%c0_85, %c7_86, %c0_87], %319 {strides = array<i32>} : memref<2x8x32xf32, #tpu.memory_space<vmem>>, vector<2x1x16xf32>,
    %320 = vector.extract_strided_slice %315 {offsets = [0, 16], sizes = [2, 16], strides = [1, 1]} : vector<2x32xf32> to vector<2x16xf32>
    %c0_88 = arith.constant 0 : index
    %c0_89 = arith.constant 0 : index
    %c16_90 = arith.constant 16 : index
    %321 = vector.load %arg9[%c0_88, %c0_89, %c16_90] : memref<2x8x32xf32, #tpu.memory_space<vmem>>, vector<2x1x16xf32>
    %322 = vector.shape_cast %321 : vector<2x1x16xf32> to vector<2x16xf32>
    %323 = vector.shape_cast %320 : vector<2x16xf32> to vector<2x1x16xf32>
    tpu.vector_store %arg9[%c0_88, %c0_89, %c16_90], %323 {strides = array<i32>} : memref<2x8x32xf32, #tpu.memory_space<vmem>>, vector<2x1x16xf32>,
    %c0_91 = arith.constant 0 : index
    %c0_92 = arith.constant 0 : index
    %c0_93 = arith.constant 0 : index
    %324 = vector.load %arg9[%c0_91, %c0_92, %c0_93] : memref<2x8x32xf32, #tpu.memory_space<vmem>>, vector<2x8x32xf32>
    %325 = vector.shape_cast %324 : vector<2x8x32xf32> to vector<16x32xf32>
    %c0_94 = arith.constant 0 : index
    %c0_95 = arith.constant 0 : index
    %326 = vector.load %arg6[%c0_94, %c0_95] : memref<32x128xf32, #tpu.memory_space<vmem>>, vector<32x128xf32>
    %cst_96 = arith.constant dense<0.000000e+00> : vector<16x128xf32>
    %327 = tpu.matmul %325, %326, %cst_96 {dimension_numbers = #tpu.dot_dimension_numbers<[1], [0], [0], [1], [0, 0, 1, 1], [], []>} : vector<16x32xf32>, vector<32x128xf32>, vector<16x128xf32> -> vector<16x128xf32>
    %c0_97 = arith.constant 0 : index
    %c0_98 = arith.constant 0 : index
    %328 = vector.load %arg7[%c0_97, %c0_98] : memref<1x128xf32, #tpu.memory_space<vmem>>, vector<1x128xf32>
    %329 = vector.broadcast %328 : vector<1x128xf32> to vector<16x128xf32>
    %330 = arith.addf %327, %329 : vector<16x128xf32>
    %c0_99 = arith.constant 0 : index
    %c0_100 = arith.constant 0 : index
    %331 = vector.load %arg3[%c0_99, %c0_100] : memref<16x1xf32, #tpu.memory_space<vmem>>, vector<16x1xf32>
    %332 = vector.broadcast %331 : vector<16x1xf32> to vector<16x128xf32>
    %333 = arith.mulf %330, %332 : vector<16x128xf32>
    %c0_101 = arith.constant 0 : index
    %c0_102 = arith.constant 0 : index
    %334 = vector.load %arg8[%c0_101, %c0_102] : memref<16x128xf32, #tpu.memory_space<vmem>>, vector<16x128xf32>
    tpu.vector_store %arg8[%c0_101, %c0_102], %333 {strides = array<i32>} : memref<16x128xf32, #tpu.memory_space<vmem>>, vector<16x128xf32>,
    return
  }
}

</mosaic_0001>

<bundles_post_ra>
// kernel: ner_rnn_forward.1
= control target key start
LH: loop header
LB: loop body
LE: loop exit
PB: predicated region body
PF: predicated region fallthrough
CT: control target
= control target key end

     0   :  { %13 = vsyncpa [#allocation4], 0  ;;  %s2719_s0 = inlined_call_operand.vmem [shape: s32[16,1], index: 0, kind: input, shape index: {}]   ;;  %s2720_s1 = inlined_call_operand.vmem [shape: s32[16,1], index: 1, kind: input, shape index: {}]   ;;  %s2721_s2 = inlined_call_operand.vmem [shape: f32[2,8,32], index: 2, kind: input, shape index: {}]   ;;  %s2722_s3 = inlined_call_operand.vmem [shape: f32[16,1], index: 3, kind: input, shape index: {}]   ;;  %s2723_s4 = inlined_call_operand.vmem [shape: f32[128,128], index: 4, kind: input, shape index: {}]   ;;  %s2724_s5 = inlined_call_operand.hbm [shape: f32[32,128], index: 5, kind: input, shape index: {}]   ;;  %s2725_s6 = inlined_call_operand.hbm [shape: f32[32,128], index: 6, kind: input, shape index: {}]   ;;  %s2726_s7 = inlined_call_operand.vmem [shape: f32[1,128], index: 7, kind: input, shape index: {}]   ;;  %s2727_s8 = inlined_call_operand.hbm [shape: f32[16,128], index: 8, kind: output, shape index: {}]  }
   0x1   :  { %14 = vsyncpa [#allocation7], 0 }
   0x2   :  { %15 = vsyncpa [#allocation5], 0  ;;  %s2117_s27 = smov [#allocation3]   ;;  %s2045_s9 = scalar_lea.hbm %s2724_s5, 512 }
   0x3   :  { %s31_s28 = sshll.u32 %s2117_s27, 4  ;;  %p2046_p0 = scmp.ne.s32.totalorder %s2724_s5, %s2045_s9  ;;  %s32_s28 = int_to_ptr.vmem [resolvable:$true] %s31_s28 }
   0x4   :  { %p2049_p1 = scmp.lt.u32.totalorder %s2045_s9, %s2724_s5 }
   0x6   :  { %p2051_p2 = pnand %p2049_p1, %p2046_p0 }
   0x8   :  { %2054 = shalt.err (!%p2051_p2)
}
   0x9   :  { %s2055_s14 = scalar_lea.vmem %s32_s28, 512  ;;  %p2060_p4 = scmp.lt.s32.totalorder %s32_s28, %s32_s28 }
   0xa   :  { %p2056_p3 = scmp.ne.s32.totalorder %s32_s28, %s2055_s14  ;;  %p2061_p5 = scmp.lt.s32.totalorder %s2055_s14, %s2055_s14 }
   0xc   :  { %p2062_p6 = por %p2061_p5, %p2060_p4 }
   0xe   :  { %p2063_p7 = pnand %p2062_p6, %p2056_p3 }
  0x10   :  { %2066 = shalt.err (!%p2063_p7)
}
  0x11   :  { %s2118_s15 = smov 128   ;;  %s2119_s16 = smov 8  }
  0x12   :  { %37 = dma.hbm_to_vmem [thread:$0]  %s2724_s5, 512, %s32_s28, [#allocation4], %s2118_s15, %s2118_s15, %s2119_s16  }
  0x13   :  { %s2120_s19 = smov [#allocation6]   ;;  %s2067_s23 = scalar_lea.hbm %s2725_s6, 512 }
  0x14   :  { %s43_s20 = sshll.u32 %s2120_s19, 4  ;;  %p2068_p8 = scmp.ne.s32.totalorder %s2725_s6, %s2067_s23  ;;  %s44_s20 = int_to_ptr.vmem [resolvable:$true] %s43_s20 }
  0x15   :  { %p2071_p9 = scmp.lt.u32.totalorder %s2067_s23, %s2725_s6 }
  0x17   :  { %p2073_p10 = pnand %p2071_p9, %p2068_p8 }
  0x19   :  { %2076 = shalt.err (!%p2073_p10)
}
  0x1a   :  { %s2077_s29 = scalar_lea.vmem %s44_s20, 512  ;;  %p2082_p12 = scmp.lt.s32.totalorder %s44_s20, %s44_s20 }
  0x1b   :  { %p2078_p11 = scmp.ne.s32.totalorder %s44_s20, %s2077_s29  ;;  %p2083_p13 = scmp.lt.s32.totalorder %s2077_s29, %s2077_s29 }
  0x1d   :  { %p2084_p0 = por %p2083_p13, %p2082_p12 }
  0x1f   :  { %p2085_p1 = pnand %p2084_p0, %p2078_p11 }
  0x21   :  { %2088 = shalt.err (!%p2085_p1)
}
  0x22   :  { %49 = dma.hbm_to_vmem [thread:$0]  %s2725_s6, 512, %s44_s20, [#allocation7], %s2118_s15, %s2118_s15, %s2119_s16  }
  0x23   :  { %2111 = dma.done.wait [#allocation4], 512  }
  0x24   :  { %2112 = vsyncadd [#allocation4], 4294966784 }
  0x25   :  { %2113 = dma.done.wait [#allocation7], 512  }
  0x26   :  { %2114 = vsyncadd [#allocation7], 4294966784  ;;  %v2121_v0 = vmov 0   ;;  %v2122_v1 = vmov 0.0|0.0   ;;  %v61_v2 = vld [vmem:[%s2719_s0 + $0x8] sm:$0xff]  ;;  %v60_v3 = vld [vmem:[%s2719_s0] sm:$0xff]  ;;  %v58_v37 = vlaneseq }
  0x27   :  { %1978 = vset.pattern.permute.xlu1 %v2121_v0  ;;  %1977 = vset.pattern.permute.xlu0 %v2121_v0  ;;  %v71_v4 = vld [vmem:[%s2720_s1 + $0x8] sm:$0xff]  ;;  %v86_v5 = vld [vmem:[%s2723_s4] sm:$0xff]  ;;  %v88_v9 = vld [vmem:[%s2723_s4 + $0x10] sm:$0xff]  ;;  %vm2123_vm0 = vmmov 0   ;;  %v2124_v11 = vmov 0.0   ;;  %v2125_v43 = vmov 1.0  }
  0x28   :  { %1908 = vmatprep.subr.bf16.mxu1 %v2122_v1  ;;  %66 = vperm.xlu1 %1978, %v61_v2   ;;  %v87_v6 = vld [vmem:[%s2723_s4 + $0x8] sm:$0xff]  ;;  %v70_v7 = vld [vmem:[%s2720_s1] sm:$0xff]  ;;  %v89_v10 = vld [vmem:[%s2723_s4 + $0x18] sm:$0xff]  ;;  %v59_v40 = vand.u32 127, %v58_v37  ;;  %s2127_s24 = smov 64   ;;  %s2128_s25 = smov 96  }
  0x29   :  { %63 = vperm.xlu0 %1977, %v60_v3   ;;  %v1876_v8 = vpack.c.bf16 %v87_v6, %v86_v5  ;;  %1785 = vmatprep.mubr.msk.f32.mxu1 %vm2123_vm0, %v2124_v11  ;;  %v1880_v12 = vpack.c.bf16 %v89_v10, %v88_v9  ;;  %v90_v13 = vld [vmem:[%s2723_s4 + $0x20] sm:$0xff]  ;;  %v91_v14 = vld [vmem:[%s2723_s4 + $0x28] sm:$0xff]  ;;  %v177_v15 = vld [vmem:[#allocation3] sm:$0xff]  ;;  %vm331_vm7 = vcmask 122880   ;;  %vm334_vm8 = vcmask 254080  }
  0x2a   :  { %v178_v16 = vld [vmem:[#allocation3 + $0x8] sm:$0xff]  ;;  %v179_v18 = vld [vmem:[#allocation3 + $0x10] sm:$0xff]  ;;  %v1884_v19 = vpack.c.bf16 %v91_v14, %v90_v13  ;;  %v180_v20 = vld [vmem:[#allocation3 + $0x18] sm:$0xff]  ;;  %vm340_vm9 = vcmask 1041409   ;;  %vm183_vm10 = vcmask 261120   ;;  %vm503_vm11 = vcmask 123905  }
  0x2b   :  { %1877 = vmatprep.subr.bf16.mxu0 %v1876_v8  ;;  %v2238_v17 = vpack.c.bf16 %v178_v16, %v177_v15  ;;  %v92_v21 = vld [vmem:[%s2723_s4 + $0x30] sm:$0xff]  ;;  %v93_v22 = vld [vmem:[%s2723_s4 + $0x38] sm:$0xff]  ;;  %v2247_v23 = vpack.c.bf16 %v180_v20, %v179_v18  ;;  %v94_v25 = vld [vmem:[%s2723_s4 + $0x40] sm:$0xff]  ;;  %vm506_vm12 = vcmask 255105   ;;  %vm676_vm13 = vcmask 124930  }
  0x2c   :  { %76 = vperm.xlu1 %1978, %v71_v4   ;;  %1879 = vmatpush3.bf16.msra.mxu0 %v1876_v8  ;;  %v1888_v24 = vpack.c.bf16 %v93_v22, %v92_v21  ;;  %v95_v26 = vld [vmem:[%s2723_s4 + $0x48] sm:$0xff]  ;;  %v96_v28 = vld [vmem:[%s2723_s4 + $0x50] sm:$0xff]  ;;  %v97_v29 = vld [vmem:[%s2723_s4 + $0x58] sm:$0xff]  ;;  %vm679_vm14 = vcmask 256130   ;;  %vm850_vm15 = vcmask 125955  }
  0x2d   :  { %73 = vperm.xlu0 %1977, %v70_v7   ;;  %1881 = vmatprep.subr.bf16.mxu0 %v1880_v12  ;;  %v1892_v27 = vpack.c.bf16 %v95_v26, %v94_v25  ;;  %v1896_v30 = vpack.c.bf16 %v97_v29, %v96_v28  ;;  %v98_v31 = vld [vmem:[%s2723_s4 + $0x60] sm:$0xff]  ;;  %v99_v32 = vld [vmem:[%s2723_s4 + $0x68] sm:$0xff]  ;;  %v100_v34 = vld [vmem:[%s2723_s4 + $0x70] sm:$0xff] }
  0x2e   :  { %1910 = vmatpush3.bf16.msra.mxu1 %v2238_v17  ;;  %v1900_v33 = vpack.c.bf16 %v99_v32, %v98_v31  ;;  %v101_v35 = vld [vmem:[%s2723_s4 + $0x78] sm:$0xff]  ;;  %s2126_s4 = smov 32   ;;  %v2309_v10 = vld [vmem:[%s2721_s2 + $0x8] sm:$0xff] }
  0x2f   :  { %1911 = vmatprep.subr.bf16.mxu1 %v2122_v1  ;;  %v1904_v36 = vpack.c.bf16 %v101_v35, %v100_v34  ;;  %v2317_v13 = vsub.f32 1.0, %v2309_v10 }
  0x30   :  { %1883 = vmatpush3.bf16.msra.mxu0 %v1880_v12  ;;  %v2314_v12 = vld [vmem:[%s2721_s2] sm:$0xff] }
  0x31   :  { %1885 = vmatprep.subr.bf16.mxu0 %v1884_v19  ;;  %v2320_v14 = vsub.f32 1.0, %v2314_v12  ;;  %v316_v15 = vmul.f32 0.0, %v2317_v13 }
  0x32   :  { %1913 = vmatpush3.bf16.msra.mxu1 %v2247_v23 }
  0x33   :  { %1914 = vmatprep.subr.bf16.mxu1 %v2122_v1  ;;  %v315_v18 = vmul.f32 0.0, %v2320_v14 }
  0x34   :  { %1887 = vmatpush3.bf16.msra.mxu0 %v1884_v19 }
  0x35   :  { %1889 = vmatprep.subr.bf16.mxu0 %v1888_v24  ;;  %1786 = vmatmul.mubr.f32.vlgmr.msra.gmra.mrb[0].mxu1 %v2124_v11 }
  0x36   :  { %1916 = vmatpush3.bf16.msra.mxu1 %v2238_v17  ;;  %1796 = vmatprep.mubr.msk.f32.mxu1 %vm2123_vm0, %v2124_v11 }
  0x37   :  { %1917 = vmatprep.subr.bf16.mxu1 %v2122_v1 }
  0x38   :  { %1891 = vmatpush3.bf16.msra.mxu0 %v1888_v24 }
  0x39   :  { %1893 = vmatprep.subr.bf16.mxu0 %v1892_v27 }
  0x3a   :  { %1919 = vmatpush3.bf16.msra.mxu1 %v2247_v23 }
  0x3b   :  { %1920 = vmatprep.subr.bf16.mxu1 %v2122_v1 }
  0x3c   :  { %1895 = vmatpush3.bf16.msra.mxu0 %v1892_v27 }
  0x3d   :  { %1897 = vmatprep.subr.bf16.mxu0 %v1896_v30 }
  0x40   :  { %1899 = vmatpush3.bf16.msra.mxu0 %v1896_v30 }
  0x41   :  { %1901 = vmatprep.subr.bf16.mxu0 %v1900_v33 }
  0x44   :  { %1903 = vmatpush3.bf16.msra.mxu0 %v1900_v33 }
  0x45   :  { %1905 = vmatprep.subr.bf16.mxu0 %v1904_v36 }
  0x48   :  { %1907 = vmatpush3.bf16.msra.mxu0 %v1904_v36 }
  0x49   :  { %1932 = vmatprep.subr.bf16.mxu0 %v2122_v1 }
  0xa7   :  { %v67_v38 = vpop.permute.xlu1 %66 }
  0xa8   :  { %v64_v39 = vpop.permute.xlu0 %63  ;;  %vm69_vm1 = vcmp.eq.s32.totalorder %v59_v40, %v67_v38 }
  0xa9   :  { %vm68_vm4 = vcmp.eq.s32.totalorder %v59_v40, %v64_v39 }
  0xab   :  { %v77_v41 = vpop.permute.xlu1 %76 }
  0xac   :  { %v74_v42 = vpop.permute.xlu0 %73  ;;  %vm79_vm2 = vcmp.eq.s32.totalorder %v59_v40, %v77_v41 }
  0xad   :  { %vm78_vm3 = vcmp.eq.s32.totalorder %v59_v40, %v74_v42  ;;  %vm81_vm5 = vmor %vm69_vm1, %vm79_vm2  ;;  %vm853_vm1 = vcmask 257155   ;;  %vm1024_vm2 = vcmask 126980  }
  0xae   :  { %vm80_vm6 = vmor %vm68_vm4, %vm78_vm3  ;;  %vm1027_vm3 = vcmask 258180   ;;  %vm1201_vm4 = vcmask 259205  }
  0xaf   :  { %1774 = vmatprep.mubr.msk.f32.mxu0 %vm80_vm6, %v2125_v43  ;;  %vm1375_vm6 = vcmask 260230  }
  0xb0   :  { %1775 = vmatmul.mubr.msk.f32.vlgmr.msra.gmra.mrb[0].mxu0 %vm81_vm5, %v2125_v43  ;;  %vm1372_vm5 = vcmask 129030  }
  0xb1   :  { %1934 = vmatpush3.bf16.msra.mxu0 %v2238_v17  ;;  %1829 = vmatprep.mubr.msk.f32.mxu0 %vm2123_vm0, %v2124_v11 }
  0xb2   :  { %1935 = vmatprep.subr.bf16.mxu0 %v2122_v1 }
  0xb5   :  { %1937 = vmatpush3.bf16.msra.mxu0 %v2247_v23 }
  0xb6   :  { %1944 = vmatprep.subr.bf16.mxu0 %v2122_v1 }
 0x108   :  { %v253_v44 = vpop.f32.mrb[0].mxu1 }
 0x109   :  { %v1787_v45 = vpop.f32.mrb[1].mxu1  ;;  %v258_v46 = vrot.slane %v253_v44, 1 }
 0x183   :  { %v2290_v47 = vpop.f32.mrb[0].mxu0 }
 0x184   :  { %v262_v48 = vadd.f32 %v2290_v47, %v258_v46  ;;  %v2293_v49 = vpop.f32.mrb[1].mxu0 }
 0x185   :  { %v261_v50 = vadd.f32 %v253_v44, %v2293_v49 }
 0x186   :  { %1979 = vtanh.f32 %v262_v48 }
 0x187   :  { %1981 = vtanh.f32 %v261_v50 }
 0x190   :  { %v1980_v51 = vpop.eup %1979 }
 0x191   :  { %v1982_v52 = vpop.eup %1981  ;;  %275 = vrot.lane.b32.xlu0 %v1980_v51, %s2126_s4  ;;  %v266_v53 = vmul.f32 0.5, %v1980_v51 }
 0x192   :  { %273 = vrot.lane.b32.xlu1 %v1982_v52, %s2126_s4  ;;  %v265_v54 = vmul.f32 0.5, %v1982_v52 }
 0x193   :  { %v268_v55 = vadd.f32 0.5, %v266_v53 }
 0x194   :  { %v267_v57 = vadd.f32 0.5, %v265_v54 }
 0x195   :  { %v270_v61 = vmul.f32 0.0, %v268_v55 }
 0x196   :  { %v269_v63 = vmul.f32 0.0, %v267_v57 }
 0x203   :  { %v276_v56 = vpop.permute.xlu0 %275 }
 0x204   :  { %v280_v58 = vmul.f32 %v276_v56, %v268_v55  ;;  %v274_v59 = vpop.permute.xlu1 %273 }
 0x205   :  { %v279_v60 = vmul.f32 %v274_v59, %v267_v57 }
 0x206   :  { %285 = vrot.lane.b32.xlu0 %v280_v58, %s2126_s4 }
 0x207   :  { %283 = vrot.lane.b32.xlu1 %v279_v60, %s2126_s4 }
 0x278   :  { %v286_v62 = vpop.permute.xlu0 %285 }
 0x279   :  { %v290_v0 = vadd.f32 %v286_v62, %v270_v61  ;;  %v284_v2 = vpop.permute.xlu1 %283 }
 0x27a   :  { %v289_v3 = vadd.f32 %v284_v2, %v269_v63 }
 0x27b   :  { %1983 = vtanh.f32 %v290_v0 }
 0x27c   :  { %1985 = vtanh.f32 %v289_v3 }
 0x285   :  { %v1984_v4 = vpop.eup %1983 }
 0x286   :  { %v1986_v5 = vpop.eup %1985  ;;  %297 = vrot.lane.b32.xlu0 %v1984_v4, %s2126_s4 }
 0x287   :  { %295 = vrot.lane.b32.xlu1 %v1986_v5, %s2126_s4 }
 0x2f8   :  { %v298_v6 = vpop.permute.xlu0 %297 }
 0x2f9   :  { %v302_v7 = vmul.f32 %v298_v6, %v268_v55  ;;  %v296_v8 = vpop.permute.xlu1 %295 }
 0x2fa   :  { %v301_v9 = vmul.f32 %v296_v8, %v267_v57 }
 0x2fb   :  { %307 = vrot.lane.b32.xlu0 %v302_v7, %s2127_s24 }
 0x2fc   :  { %305 = vrot.lane.b32.xlu1 %v301_v9, %s2127_s24 }
 0x2ff   :  { %321 = vrot.lane.b32.xlu0 %v289_v3, %s2128_s25 }
 0x300   :  { %323 = vrot.lane.b32.xlu1 %v290_v0, %s2128_s25 }
 0x36d   :  { %v308_v16 = vpop.permute.xlu0 %307 }
 0x36e   :  { %v312_v19 = vmul.f32 %v308_v16, %v2309_v10  ;;  %v306_v20 = vpop.permute.xlu1 %305 }
 0x36f   :  { %v311_v21 = vmul.f32 %v306_v20, %v2314_v12 }
 0x370   :  { %v2326_v22 = vadd.f32 %v316_v15, %v312_v19 }
 0x371   :  { %v2328_v24 = vadd.f32 %v315_v18, %v311_v21  ;;  %v322_v33 = vpop.permute.xlu0 %321 }
 0x372   :  { %333 = vst.msk [vmem:[#allocation2 + $0x8] sm:$0x1] %vm331_vm7, %v2326_v22  ;;  %v339_v25 = vrot.slane %v2326_v22, 7  ;;  %v324_v32 = vpop.permute.xlu1 %323  ;;  %v327_v35 = vmul.f32 %v322_v33, %v2314_v12 }
 0x373   :  { %336 = vst.msk [vmem:[#allocation2 + $0xf] sm:$0x1] %vm334_vm8, %v2326_v22  ;;  %335 = vst.msk [vmem:[#allocation2 + $0x7] sm:$0x1] %vm334_vm8, %v2328_v24  ;;  %v328_v34 = vmul.f32 %v324_v32, %v2309_v10  ;;  %v480_v3 = vrot.slane %v2328_v24, 7  ;;  %vm1533_vm8 = vcmask 261255  }
 0x374   :  { %332 = vst.msk [vmem:[#allocation2] sm:$0x1] %vm331_vm7, %v2328_v24  ;;  %v341_v26 = vsel %vm340_vm9, %v339_v25, %v2328_v24  ;;  %v2352_v38 = vadd.f32 %v327_v35, %v315_v18  ;;  %v484_v5 = vmul.f32 %v339_v25, %v2317_v13  ;;  %vm1530_vm7 = vcmask 130055  }
 0x375   :  { %1797 = vmatmul.mubr.msk.f32.vlgmr.msra.gmra.mrb[2].mxu1 %vm183_vm10, %v341_v26  ;;  %v2350_v36 = vadd.f32 %v328_v34, %v316_v15  ;;  %v483_v9 = vmul.f32 %v480_v3, %v2320_v14 }
 0x376   :  { %1922 = vmatpush3.bf16.msra.mxu1 %v2238_v17  ;;  %1807 = vmatprep.mubr.msk.f32.mxu1 %vm2123_vm0, %v2124_v11  ;;  %v428_v41 = vrot.slane %v2352_v38, 7 }
 0x377   :  { %1923 = vmatprep.subr.bf16.mxu1 %v2122_v1  ;;  %v429_v40 = vrot.slane %v2350_v36, 7 }
 0x379   :  { %v500_v32 = vmul.f32 %v429_v40, %v2317_v13 }
 0x37a   :  { %1925 = vmatpush3.bf16.msra.mxu1 %v2247_v23 }
 0x37b   :  { %1926 = vmatprep.subr.bf16.mxu1 %v2122_v1 }
 0x448   :  { %v410_v27 = vpop.f32.mrb[2].mxu1 }
 0x449   :  { %v415_v28 = vrot.slane %v410_v27, 7  ;;  %v419_v29 = vadd.f32 %v2290_v47, %v410_v27  ;;  %v1798_v30 = vpop.f32.mrb[3].mxu1 }
 0x44b   :  { %v418_v31 = vadd.f32 %v415_v28, %v2293_v49  ;;  %1987 = vtanh.f32 %v419_v29 }
 0x44d   :  { %1989 = vtanh.f32 %v418_v31  ;;  %v499_v31 = vmul.f32 %v428_v41, %v2320_v14 }
 0x455   :  { %v1988_v37 = vpop.eup %1987 }
 0x456   :  { %442 = vrot.lane.b32.xlu1 %v1988_v37, %s2126_s4  ;;  %v423_v42 = vmul.f32 0.5, %v1988_v37 }
 0x457   :  { %v1990_v39 = vpop.eup %1989 }
 0x458   :  { %440 = vrot.lane.b32.xlu0 %v1990_v39, %s2126_s4  ;;  %v422_v43 = vmul.f32 0.5, %v1990_v39  ;;  %v425_v44 = vadd.f32 0.5, %v423_v42 }
 0x45a   :  { %432 = vrot.lane.b32.xlu1 %v429_v40, %s2126_s4  ;;  %v424_v48 = vadd.f32 0.5, %v422_v43 }
 0x45c   :  { %430 = vrot.lane.b32.xlu0 %v428_v41, %s2126_s4 }
 0x4c8   :  { %v443_v45 = vpop.permute.xlu1 %442 }
 0x4c9   :  { %v447_v46 = vmul.f32 %v443_v45, %v425_v44 }
 0x4ca   :  { %v441_v50 = vpop.permute.xlu0 %440 }
 0x4cb   :  { %v446_v51 = vmul.f32 %v441_v50, %v424_v48  ;;  %452 = vrot.lane.b32.xlu1 %v447_v46, %s2126_s4 }
 0x4cc   :  { %v433_v52 = vpop.permute.xlu1 %432 }
 0x4cd   :  { %450 = vrot.lane.b32.xlu0 %v446_v51, %s2126_s4  ;;  %v437_v54 = vmul.f32 %v433_v52, %v425_v44 }
 0x4ce   :  { %v431_v53 = vpop.permute.xlu0 %430 }
 0x4cf   :  { %v436_v56 = vmul.f32 %v431_v53, %v424_v48 }
 0x53d   :  { %v453_v55 = vpop.permute.xlu1 %452 }
 0x53e   :  { %v457_v57 = vadd.f32 %v453_v55, %v437_v54 }
 0x53f   :  { %v451_v58 = vpop.permute.xlu0 %450 }
 0x540   :  { %1991 = vtanh.f32 %v457_v57  ;;  %v456_v59 = vadd.f32 %v451_v58, %v436_v56 }
 0x542   :  { %1993 = vtanh.f32 %v456_v59 }
 0x54a   :  { %v1992_v60 = vpop.eup %1991 }
 0x54b   :  { %464 = vrot.lane.b32.xlu1 %v1992_v60, %s2126_s4 }
 0x54c   :  { %v1994_v61 = vpop.eup %1993 }
 0x54d   :  { %462 = vrot.lane.b32.xlu0 %v1994_v61, %s2126_s4 }
 0x5bd   :  { %v465_v62 = vpop.permute.xlu1 %464 }
 0x5be   :  { %v469_v63 = vmul.f32 %v465_v62, %v425_v44 }
 0x5bf   :  { %v463_v0 = vpop.permute.xlu0 %462 }
 0x5c0   :  { %v468_v2 = vmul.f32 %v463_v0, %v424_v48  ;;  %474 = vrot.lane.b32.xlu1 %v469_v63, %s2127_s24 }
 0x5c2   :  { %472 = vrot.lane.b32.xlu0 %v468_v2, %s2127_s24 }
 0x5c4   :  { %491 = vrot.lane.b32.xlu1 %v457_v57, %s2128_s25 }
 0x5c6   :  { %489 = vrot.lane.b32.xlu0 %v456_v59, %s2128_s25 }
 0x632   :  { %v475_v4 = vpop.permute.xlu1 %474 }
 0x633   :  { %v479_v6 = vmul.f32 %v475_v4, %v2309_v10 }
 0x634   :  { %v473_v7 = vpop.permute.xlu0 %472 }
 0x635   :  { %v2377_v8 = vadd.f32 %v484_v5, %v479_v6  ;;  %v478_v15 = vmul.f32 %v473_v7, %v2314_v12 }
 0x636   :  { %v492_v28 = vpop.permute.xlu1 %491 }
 0x637   :  { %505 = vst.msk [vmem:[#allocation2 + $0x8] sm:$0x2] %vm503_vm11, %v2377_v8  ;;  %v2383_v16 = vadd.f32 %v483_v9, %v478_v15  ;;  %v496_v30 = vmul.f32 %v492_v28, %v2309_v10  ;;  %v653_v0 = vrot.slane %v2377_v8, 7 }
 0x638   :  { %508 = vst.msk [vmem:[#allocation2 + $0xd] sm:$0x2] %vm506_vm12, %v2377_v8  ;;  %v490_v27 = vpop.permute.xlu0 %489 }
 0x639   :  { %504 = vst.msk [vmem:[#allocation2] sm:$0x2] %vm503_vm11, %v2383_v16  ;;  %v511_v18 = vrot.slane %v2383_v16, 1  ;;  %v495_v29 = vmul.f32 %v490_v27, %v2314_v12  ;;  %v2409_v35 = vadd.f32 %v500_v32, %v496_v30  ;;  %v652_v63 = vrot.slane %v2383_v16, 7 }
 0x63a   :  { %507 = vst.msk [vmem:[#allocation2 + $0x5] sm:$0x2] %vm506_vm12, %v2383_v16  ;;  %v657_v6 = vmul.f32 %v653_v0, %v2317_v13 }
 0x63b   :  { %v512_v19 = vsel %vm340_vm9, %v2377_v8, %v511_v18  ;;  %v2407_v33 = vadd.f32 %v499_v31, %v495_v29  ;;  %v601_v42 = vrot.slane %v2409_v35, 7  ;;  %v656_v3 = vmul.f32 %v652_v63, %v2320_v14 }
 0x63c   :  { %1808 = vmatmul.mubr.msk.f32.vlgmr.msra.gmra.mrb[4].mxu1 %vm183_vm10, %v512_v19 }
 0x63d   :  { %1928 = vmatpush3.bf16.msra.mxu1 %v2238_v17  ;;  %1818 = vmatprep.mubr.msk.f32.mxu1 %vm2123_vm0, %v2124_v11  ;;  %v600_v39 = vrot.slane %v2407_v33, 7  ;;  %v673_v31 = vmul.f32 %v601_v42, %v2317_v13 }
 0x63e   :  { %1929 = vmatprep.subr.bf16.mxu1 %v2122_v1 }
 0x63f   :  { %v672_v30 = vmul.f32 %v600_v39, %v2320_v14 }
 0x641   :  { %1931 = vmatpush3.bf16.msra.mxu1 %v2247_v23 }
 0x642   :  { %1938 = vmatprep.subr.bf16.mxu1 %v2122_v1 }
 0x70f   :  { %v581_v20 = vpop.f32.mrb[4].mxu1 }
 0x710   :  { %v586_v21 = vrot.slane %v581_v20, 6  ;;  %v587_v22 = vrot.slane %v581_v20, 7  ;;  %v1809_v24 = vpop.f32.mrb[5].mxu1 }
 0x712   :  { %v590_v25 = vadd.f32 %v586_v21, %v2293_v49  ;;  %v591_v26 = vadd.f32 %v2290_v47, %v587_v22 }
 0x714   :  { %1995 = vtanh.f32 %v590_v25 }
 0x715   :  { %1997 = vtanh.f32 %v591_v26 }
 0x71e   :  { %v1996_v34 = vpop.eup %1995 }
 0x71f   :  { %v1998_v37 = vpop.eup %1997  ;;  %612 = vrot.lane.b32.xlu0 %v1996_v34, %s2126_s4  ;;  %v594_v36 = vmul.f32 0.5, %v1996_v34 }
 0x720   :  { %614 = vrot.lane.b32.xlu1 %v1998_v37, %s2126_s4  ;;  %v595_v38 = vmul.f32 0.5, %v1998_v37 }
 0x721   :  { %v596_v40 = vadd.f32 0.5, %v594_v36 }
 0x722   :  { %v597_v43 = vadd.f32 0.5, %v595_v38 }
 0x723   :  { %602 = vrot.lane.b32.xlu0 %v600_v39, %s2126_s4 }
 0x724   :  { %604 = vrot.lane.b32.xlu1 %v601_v42, %s2126_s4 }
 0x791   :  { %v613_v41 = vpop.permute.xlu0 %612 }
 0x792   :  { %v618_v44 = vmul.f32 %v613_v41, %v596_v40  ;;  %v615_v45 = vpop.permute.xlu1 %614 }
 0x793   :  { %v619_v46 = vmul.f32 %v615_v45, %v597_v43 }
 0x794   :  { %622 = vrot.lane.b32.xlu0 %v618_v44, %s2126_s4 }
 0x795   :  { %624 = vrot.lane.b32.xlu1 %v619_v46, %s2126_s4  ;;  %v603_v48 = vpop.permute.xlu0 %602 }
 0x796   :  { %v605_v50 = vpop.permute.xlu1 %604  ;;  %v608_v51 = vmul.f32 %v603_v48, %v596_v40 }
 0x797   :  { %v609_v52 = vmul.f32 %v605_v50, %v597_v43 }
 0x806   :  { %v623_v53 = vpop.permute.xlu0 %622 }
 0x807   :  { %v628_v54 = vadd.f32 %v623_v53, %v608_v51  ;;  %v625_v55 = vpop.permute.xlu1 %624 }
 0x808   :  { %v629_v56 = vadd.f32 %v625_v55, %v609_v52 }
 0x809   :  { %1999 = vtanh.f32 %v628_v54 }
 0x80a   :  { %2001 = vtanh.f32 %v629_v56 }
 0x813   :  { %v2000_v57 = vpop.eup %1999 }
 0x814   :  { %v2002_v58 = vpop.eup %2001  ;;  %634 = vrot.lane.b32.xlu0 %v2000_v57, %s2126_s4 }
 0x815   :  { %636 = vrot.lane.b32.xlu1 %v2002_v58, %s2126_s4 }
 0x886   :  { %v635_v59 = vpop.permute.xlu0 %634 }
 0x887   :  { %v640_v60 = vmul.f32 %v635_v59, %v596_v40  ;;  %v637_v61 = vpop.permute.xlu1 %636 }
 0x888   :  { %v641_v62 = vmul.f32 %v637_v61, %v597_v43 }
 0x889   :  { %644 = vrot.lane.b32.xlu0 %v640_v60, %s2127_s24 }
 0x88a   :  { %646 = vrot.lane.b32.xlu1 %v641_v62, %s2127_s24 }
 0x88d   :  { %662 = vrot.lane.b32.xlu0 %v628_v54, %s2128_s25 }
 0x88e   :  { %664 = vrot.lane.b32.xlu1 %v629_v56, %s2128_s25 }
 0x8fb   :  { %v645_v2 = vpop.permute.xlu0 %644 }
 0x8fc   :  { %v650_v4 = vmul.f32 %v645_v2, %v2314_v12  ;;  %v647_v5 = vpop.permute.xlu1 %646 }
 0x8fd   :  { %v651_v7 = vmul.f32 %v647_v5, %v2309_v10 }
 0x8fe   :  { %v2435_v9 = vadd.f32 %v656_v3, %v650_v4 }
 0x8ff   :  { %v2437_v15 = vadd.f32 %v657_v6, %v651_v7  ;;  %v663_v26 = vpop.permute.xlu0 %662 }
 0x900   :  { %677 = vst.msk [vmem:[#allocation2] sm:$0x4] %vm676_vm13, %v2435_v9  ;;  %v684_v8 = vrot.slane %v2435_v9, 2  ;;  %v665_v27 = vpop.permute.xlu1 %664  ;;  %v668_v28 = vmul.f32 %v663_v26, %v2314_v12  ;;  %v826_v62 = vrot.slane %v2435_v9, 7 }
 0x901   :  { %680 = vst.msk [vmem:[#allocation2 + $0x3] sm:$0x4] %vm679_vm14, %v2435_v9  ;;  %681 = vst.msk [vmem:[#allocation2 + $0xb] sm:$0x4] %vm679_vm14, %v2437_v15  ;;  %v685_v16 = vrot.slane %v2437_v15, 1  ;;  %v669_v29 = vmul.f32 %v665_v27, %v2309_v10  ;;  %v827_v63 = vrot.slane %v2437_v15, 7 }
 0x902   :  { %678 = vst.msk [vmem:[#allocation2 + $0x8] sm:$0x4] %vm676_vm13, %v2437_v15  ;;  %v2463_v32 = vadd.f32 %v672_v30, %v668_v28  ;;  %v830_v2 = vmul.f32 %v826_v62, %v2320_v14 }
 0x903   :  { %v686_v18 = vsel %vm340_vm9, %v685_v16, %v684_v8  ;;  %v2465_v37 = vadd.f32 %v673_v31, %v669_v29  ;;  %v831_v5 = vmul.f32 %v827_v63, %v2317_v13 }
 0x904   :  { %1819 = vmatmul.mubr.msk.f32.vlgmr.msra.gmra.mrb[6].mxu1 %vm183_vm10, %v686_v18  ;;  %v774_v38 = vrot.slane %v2463_v32, 7 }
 0x905   :  { %1940 = vmatpush3.bf16.msra.mxu1 %v2238_v17  ;;  %1840 = vmatprep.mubr.msk.f32.mxu1 %vm2123_vm0, %v2124_v11  ;;  %v775_v40 = vrot.slane %v2465_v37, 7 }
 0x906   :  { %1941 = vmatprep.subr.bf16.mxu1 %v2122_v1  ;;  %v846_v29 = vmul.f32 %v774_v38, %v2320_v14 }
 0x907   :  { %v847_v30 = vmul.f32 %v775_v40, %v2317_v13 }
 0x909   :  { %1943 = vmatpush3.bf16.msra.mxu1 %v2247_v23 }
 0x90a   :  { %1950 = vmatprep.subr.bf16.mxu1 %v2122_v1 }
 0x9d7   :  { %v755_v19 = vpop.f32.mrb[6].mxu1 }
 0x9d8   :  { %v760_v20 = vrot.slane %v755_v19, 5  ;;  %v761_v21 = vrot.slane %v755_v19, 6  ;;  %v1820_v22 = vpop.f32.mrb[7].mxu1 }
 0x9da   :  { %v764_v24 = vadd.f32 %v760_v20, %v2293_v49  ;;  %v765_v25 = vadd.f32 %v2290_v47, %v761_v21 }
 0x9dc   :  { %2003 = vtanh.f32 %v764_v24 }
 0x9dd   :  { %2005 = vtanh.f32 %v765_v25 }
 0x9e6   :  { %v2004_v34 = vpop.eup %2003 }
 0x9e7   :  { %v2006_v36 = vpop.eup %2005  ;;  %786 = vrot.lane.b32.xlu0 %v2004_v34, %s2126_s4  ;;  %v768_v33 = vmul.f32 0.5, %v2004_v34 }
 0x9e8   :  { %788 = vrot.lane.b32.xlu1 %v2006_v36, %s2126_s4  ;;  %v769_v35 = vmul.f32 0.5, %v2006_v36 }
 0x9e9   :  { %v770_v39 = vadd.f32 0.5, %v768_v33 }
 0x9ea   :  { %v771_v41 = vadd.f32 0.5, %v769_v35 }
 0x9eb   :  { %776 = vrot.lane.b32.xlu0 %v774_v38, %s2126_s4 }
 0x9ec   :  { %778 = vrot.lane.b32.xlu1 %v775_v40, %s2126_s4 }
 0xa59   :  { %v787_v42 = vpop.permute.xlu0 %786 }
 0xa5a   :  { %v792_v43 = vmul.f32 %v787_v42, %v770_v39  ;;  %v789_v44 = vpop.permute.xlu1 %788 }
 0xa5b   :  { %v793_v45 = vmul.f32 %v789_v44, %v771_v41 }
 0xa5c   :  { %796 = vrot.lane.b32.xlu0 %v792_v43, %s2126_s4 }
 0xa5d   :  { %798 = vrot.lane.b32.xlu1 %v793_v45, %s2126_s4  ;;  %v777_v46 = vpop.permute.xlu0 %776 }
 0xa5e   :  { %v779_v48 = vpop.permute.xlu1 %778  ;;  %v782_v50 = vmul.f32 %v777_v46, %v770_v39 }
 0xa5f   :  { %v783_v51 = vmul.f32 %v779_v48, %v771_v41 }
 0xace   :  { %v797_v52 = vpop.permute.xlu0 %796 }
 0xacf   :  { %v802_v53 = vadd.f32 %v797_v52, %v782_v50  ;;  %v799_v54 = vpop.permute.xlu1 %798 }
 0xad0   :  { %v803_v55 = vadd.f32 %v799_v54, %v783_v51 }
 0xad1   :  { %2007 = vtanh.f32 %v802_v53 }
 0xad2   :  { %2009 = vtanh.f32 %v803_v55 }
 0xadb   :  { %v2008_v56 = vpop.eup %2007 }
 0xadc   :  { %v2010_v57 = vpop.eup %2009  ;;  %808 = vrot.lane.b32.xlu0 %v2008_v56, %s2126_s4 }
 0xadd   :  { %810 = vrot.lane.b32.xlu1 %v2010_v57, %s2126_s4 }
 0xb4e   :  { %v809_v58 = vpop.permute.xlu0 %808 }
 0xb4f   :  { %v814_v59 = vmul.f32 %v809_v58, %v770_v39  ;;  %v811_v60 = vpop.permute.xlu1 %810 }
 0xb50   :  { %v815_v61 = vmul.f32 %v811_v60, %v771_v41 }
 0xb51   :  { %818 = vrot.lane.b32.xlu0 %v814_v59, %s2127_s24 }
 0xb52   :  { %820 = vrot.lane.b32.xlu1 %v815_v61, %s2127_s24 }
 0xb55   :  { %836 = vrot.lane.b32.xlu0 %v802_v53, %s2128_s25 }
 0xb56   :  { %838 = vrot.lane.b32.xlu1 %v803_v55, %s2128_s25 }
 0xbc3   :  { %v819_v0 = vpop.permute.xlu0 %818 }
 0xbc4   :  { %v824_v3 = vmul.f32 %v819_v0, %v2314_v12  ;;  %v821_v4 = vpop.permute.xlu1 %820 }
 0xbc5   :  { %v825_v6 = vmul.f32 %v821_v4, %v2309_v10 }
 0xbc6   :  { %v2491_v7 = vadd.f32 %v830_v2, %v824_v3 }
 0xbc7   :  { %v2493_v8 = vadd.f32 %v831_v5, %v825_v6  ;;  %v837_v25 = vpop.permute.xlu0 %836 }
 0xbc8   :  { %851 = vst.msk [vmem:[#allocation2] sm:$0x8] %vm850_vm15, %v2491_v7  ;;  %v858_v9 = vrot.slane %v2491_v7, 3  ;;  %v839_v26 = vpop.permute.xlu1 %838  ;;  %v842_v27 = vmul.f32 %v837_v25, %v2314_v12  ;;  %v1000_v61 = vrot.slane %v2491_v7, 7 }
 0xbc9   :  { %854 = vst.msk [vmem:[#allocation2 + $0x1] sm:$0x8] %vm853_vm1, %v2491_v7  ;;  %855 = vst.msk [vmem:[#allocation2 + $0x9] sm:$0x8] %vm853_vm1, %v2493_v8  ;;  %v859_v15 = vrot.slane %v2493_v8, 2  ;;  %v843_v28 = vmul.f32 %v839_v26, %v2309_v10  ;;  %v1001_v62 = vrot.slane %v2493_v8, 7 }
 0xbca   :  { %852 = vst.msk [vmem:[#allocation2 + $0x8] sm:$0x8] %vm850_vm15, %v2493_v8  ;;  %v2518_v31 = vadd.f32 %v846_v29, %v842_v27  ;;  %v1004_v0 = vmul.f32 %v1000_v61, %v2320_v14 }
 0xbcb   :  { %v860_v16 = vsel %vm340_vm9, %v859_v15, %v858_v9  ;;  %v2520_v36 = vadd.f32 %v847_v30, %v843_v28  ;;  %v1005_v4 = vmul.f32 %v1001_v62, %v2317_v13 }
 0xbcc   :  { %1830 = vmatmul.mubr.msk.f32.vlgmr.msra.gmra.mrb[2].mxu0 %vm183_vm10, %v860_v16  ;;  %v948_v35 = vrot.slane %v2518_v31, 7 }
 0xbcd   :  { %1946 = vmatpush3.bf16.msra.mxu0 %v2238_v17  ;;  %1851 = vmatprep.mubr.msk.f32.mxu0 %vm2123_vm0, %v2124_v11  ;;  %v949_v39 = vrot.slane %v2520_v36, 7 }
 0xbce   :  { %1947 = vmatprep.subr.bf16.mxu0 %v2122_v1 }
 0xbd1   :  { %1949 = vmatpush3.bf16.msra.mxu0 %v2247_v23 }
 0xc9f   :  { %v929_v18 = vpop.f32.mrb[2].mxu0 }
 0xca0   :  { %v934_v19 = vrot.slane %v929_v18, 4  ;;  %v935_v20 = vrot.slane %v929_v18, 5  ;;  %v1831_v21 = vpop.f32.mrb[3].mxu0 }
 0xca2   :  { %v938_v22 = vadd.f32 %v934_v19, %v2293_v49  ;;  %v939_v24 = vadd.f32 %v2290_v47, %v935_v20 }
 0xca4   :  { %2011 = vtanh.f32 %v938_v22 }
 0xca5   :  { %2013 = vtanh.f32 %v939_v24 }
 0xcae   :  { %v2012_v34 = vpop.eup %2011 }
 0xcaf   :  { %v2014_v33 = vpop.eup %2013  ;;  %960 = vrot.lane.b32.xlu0 %v2012_v34, %s2126_s4  ;;  %v942_v32 = vmul.f32 0.5, %v2012_v34 }
 0xcb0   :  { %962 = vrot.lane.b32.xlu1 %v2014_v33, %s2126_s4  ;;  %v943_v37 = vmul.f32 0.5, %v2014_v33 }
 0xcb1   :  { %v944_v38 = vadd.f32 0.5, %v942_v32 }
 0xcb2   :  { %v945_v42 = vadd.f32 0.5, %v943_v37 }
 0xcb3   :  { %950 = vrot.lane.b32.xlu0 %v948_v35, %s2126_s4 }
 0xcb4   :  { %952 = vrot.lane.b32.xlu1 %v949_v39, %s2126_s4 }
 0xd21   :  { %v961_v40 = vpop.permute.xlu0 %960 }
 0xd22   :  { %v966_v41 = vmul.f32 %v961_v40, %v944_v38  ;;  %v963_v43 = vpop.permute.xlu1 %962 }
 0xd23   :  { %v967_v44 = vmul.f32 %v963_v43, %v945_v42 }
 0xd24   :  { %970 = vrot.lane.b32.xlu0 %v966_v41, %s2126_s4 }
 0xd25   :  { %972 = vrot.lane.b32.xlu1 %v967_v44, %s2126_s4  ;;  %v951_v45 = vpop.permute.xlu0 %950 }
 0xd26   :  { %v953_v46 = vpop.permute.xlu1 %952  ;;  %v956_v48 = vmul.f32 %v951_v45, %v944_v38 }
 0xd27   :  { %v957_v50 = vmul.f32 %v953_v46, %v945_v42 }
 0xd96   :  { %v971_v51 = vpop.permute.xlu0 %970 }
 0xd97   :  { %v976_v52 = vadd.f32 %v971_v51, %v956_v48  ;;  %v973_v53 = vpop.permute.xlu1 %972 }
 0xd98   :  { %v977_v54 = vadd.f32 %v973_v53, %v957_v50 }
 0xd99   :  { %2015 = vtanh.f32 %v976_v52 }
 0xd9a   :  { %2017 = vtanh.f32 %v977_v54 }
 0xda3   :  { %v2016_v55 = vpop.eup %2015 }
 0xda4   :  { %v2018_v56 = vpop.eup %2017  ;;  %982 = vrot.lane.b32.xlu0 %v2016_v55, %s2126_s4 }
 0xda5   :  { %984 = vrot.lane.b32.xlu1 %v2018_v56, %s2126_s4 }
 0xe16   :  { %v983_v57 = vpop.permute.xlu0 %982 }
 0xe17   :  { %v988_v58 = vmul.f32 %v983_v57, %v944_v38  ;;  %v985_v59 = vpop.permute.xlu1 %984 }
 0xe18   :  { %v989_v60 = vmul.f32 %v985_v59, %v945_v42 }
 0xe19   :  { %992 = vrot.lane.b32.xlu0 %v988_v58, %s2127_s24 }
 0xe1a   :  { %994 = vrot.lane.b32.xlu1 %v989_v60, %s2127_s24 }
 0xe1d   :  { %1010 = vrot.lane.b32.xlu0 %v976_v52, %s2128_s25 }
 0xe1e   :  { %1012 = vrot.lane.b32.xlu1 %v977_v54, %s2128_s25 }
 0xe8b   :  { %v993_v63 = vpop.permute.xlu0 %992 }
 0xe8c   :  { %v998_v2 = vmul.f32 %v993_v63, %v2314_v12  ;;  %v995_v3 = vpop.permute.xlu1 %994 }
 0xe8d   :  { %v999_v5 = vmul.f32 %v995_v3, %v2309_v10 }
 0xe8e   :  { %v2546_v6 = vadd.f32 %v1004_v0, %v998_v2 }
 0xe8f   :  { %v2548_v9 = vadd.f32 %v1005_v4, %v999_v5  ;;  %v1011_v24 = vpop.permute.xlu0 %1010 }
 0xe90   :  { %1025 = vst.msk [vmem:[#allocation2] sm:$0x10] %vm1024_vm2, %v2546_v6  ;;  %v1032_v7 = vrot.slane %v2546_v6, 4  ;;  %v1013_v25 = vpop.permute.xlu1 %1012  ;;  %v1174_v56 = vrot.slane %v2546_v6, 7 }
 0xe91   :  { %1028 = vst.msk [vmem:[#allocation2 - $0x1] sm:$0x10] %vm1027_vm3, %v2546_v6  ;;  %1029 = vst.msk [vmem:[#allocation2 + $0x7] sm:$0x10] %vm1027_vm3, %v2548_v9  ;;  %v1033_v8 = vrot.slane %v2548_v9, 3  ;;  %v1175_v57 = vrot.slane %v2548_v9, 7 }
 0xe92   :  { %1026 = vst.msk [vmem:[#allocation2 + $0x8] sm:$0x10] %vm1024_vm2, %v2548_v9  ;;  %v1178_v59 = vmul.f32 %v1174_v56, %v2320_v14 }
 0xe93   :  { %v1034_v15 = vsel %vm340_vm9, %v1033_v8, %v1032_v7  ;;  %v1179_v62 = vmul.f32 %v1175_v57, %v2317_v13 }
 0xe94   :  { %1841 = vmatmul.mubr.msk.f32.vlgmr.msra.gmra.mrb[8].mxu1 %vm183_vm10, %v1034_v15 }
 0xe95   :  { %1952 = vmatpush3.bf16.msra.mxu1 %v2238_v17  ;;  %1862 = vmatprep.mubr.msk.f32.mxu1 %vm2123_vm0, %v2124_v11  ;;  %v1016_v17 = vmul.f32 %v1011_v24, %v2314_v12  ;;  %v1017_v11 = vmul.f32 %v1013_v25, %v2309_v10  ;;  %vm1198_vm0 = vcmask 128005  }
 0xe96   :  { %1953 = vmatprep.subr.bf16.mxu1 %v2122_v1  ;;  %v1020_v1 = vmul.f32 %v948_v35, %v2320_v14 }
 0xe98   :  { %v2573_v26 = vadd.f32 %v1020_v1, %v1016_v17 }
 0xe99   :  { %1955 = vmatpush3.bf16.msra.mxu1 %v2247_v23  ;;  %v1021_v23 = vmul.f32 %v949_v39, %v2317_v13 }
 0xe9a   :  { %v1122_v30 = vrot.slane %v2573_v26, 7 }
 0xe9b   :  { %v2575_v28 = vadd.f32 %v1021_v23, %v1017_v11 }
 0xe9d   :  { %v1123_v34 = vrot.slane %v2575_v28, 7 }
 0xe9f   :  { %v1195_v24 = vmul.f32 %v1123_v34, %v2317_v13 }
 0xf67   :  { %v1103_v16 = vpop.f32.mrb[8].mxu1 }
 0xf68   :  { %v1108_v18 = vrot.slane %v1103_v16, 3  ;;  %v1109_v19 = vrot.slane %v1103_v16, 4  ;;  %v1842_v20 = vpop.f32.mrb[9].mxu1 }
 0xf6a   :  { %v1112_v21 = vadd.f32 %v1108_v18, %v2293_v49  ;;  %v1113_v22 = vadd.f32 %v2290_v47, %v1109_v19 }
 0xf6c   :  { %2019 = vtanh.f32 %v1112_v21 }
 0xf6d   :  { %2021 = vtanh.f32 %v1113_v22  ;;  %v1194_v22 = vmul.f32 %v1122_v30, %v2320_v14 }
 0xf76   :  { %v2020_v27 = vpop.eup %2019 }
 0xf77   :  { %v2022_v29 = vpop.eup %2021  ;;  %1134 = vrot.lane.b32.xlu0 %v2020_v27, %s2126_s4  ;;  %v1116_v31 = vmul.f32 0.5, %v2020_v27 }
 0xf78   :  { %1136 = vrot.lane.b32.xlu1 %v2022_v29, %s2126_s4  ;;  %v1117_v36 = vmul.f32 0.5, %v2022_v29 }
 0xf79   :  { %v1118_v33 = vadd.f32 0.5, %v1116_v31 }
 0xf7a   :  { %v1119_v39 = vadd.f32 0.5, %v1117_v36 }
 0xf7b   :  { %1124 = vrot.lane.b32.xlu0 %v1122_v30, %s2126_s4 }
 0xf7c   :  { %1126 = vrot.lane.b32.xlu1 %v1123_v34, %s2126_s4 }
 0xfe9   :  { %v1135_v35 = vpop.permute.xlu0 %1134 }
 0xfea   :  { %v1140_v32 = vmul.f32 %v1135_v35, %v1118_v33  ;;  %v1137_v37 = vpop.permute.xlu1 %1136 }
 0xfeb   :  { %v1141_v38 = vmul.f32 %v1137_v37, %v1119_v39 }
 0xfec   :  { %1144 = vrot.lane.b32.xlu0 %v1140_v32, %s2126_s4 }
 0xfed   :  { %1146 = vrot.lane.b32.xlu1 %v1141_v38, %s2126_s4  ;;  %v1125_v40 = vpop.permute.xlu0 %1124 }
 0xfee   :  { %v1127_v42 = vpop.permute.xlu1 %1126  ;;  %v1130_v41 = vmul.f32 %v1125_v40, %v1118_v33 }
 0xfef   :  { %v1131_v43 = vmul.f32 %v1127_v42, %v1119_v39 }
0x105e   :  { %v1145_v44 = vpop.permute.xlu0 %1144 }
0x105f   :  { %v1150_v45 = vadd.f32 %v1145_v44, %v1130_v41  ;;  %v1147_v46 = vpop.permute.xlu1 %1146 }
0x1060   :  { %v1151_v48 = vadd.f32 %v1147_v46, %v1131_v43 }
0x1061   :  { %2023 = vtanh.f32 %v1150_v45 }
0x1062   :  { %2025 = vtanh.f32 %v1151_v48 }
0x106b   :  { %v2024_v50 = vpop.eup %2023 }
0x106c   :  { %v2026_v51 = vpop.eup %2025  ;;  %1156 = vrot.lane.b32.xlu0 %v2024_v50, %s2126_s4 }
0x106d   :  { %1158 = vrot.lane.b32.xlu1 %v2026_v51, %s2126_s4 }
0x10de   :  { %v1157_v52 = vpop.permute.xlu0 %1156 }
0x10df   :  { %v1162_v53 = vmul.f32 %v1157_v52, %v1118_v33  ;;  %v1159_v54 = vpop.permute.xlu1 %1158 }
0x10e0   :  { %v1163_v55 = vmul.f32 %v1159_v54, %v1119_v39 }
0x10e1   :  { %1166 = vrot.lane.b32.xlu0 %v1162_v53, %s2127_s24 }
0x10e2   :  { %1168 = vrot.lane.b32.xlu1 %v1163_v55, %s2127_s24 }
0x10e5   :  { %1184 = vrot.lane.b32.xlu0 %v1150_v45, %s2128_s25 }
0x10e6   :  { %1186 = vrot.lane.b32.xlu1 %v1151_v48, %s2128_s25 }
0x1153   :  { %v1167_v58 = vpop.permute.xlu0 %1166 }
0x1154   :  { %v1172_v60 = vmul.f32 %v1167_v58, %v2314_v12  ;;  %v1169_v61 = vpop.permute.xlu1 %1168 }
0x1155   :  { %v1173_v63 = vmul.f32 %v1169_v61, %v2309_v10 }
0x1156   :  { %v2601_v0 = vadd.f32 %v1178_v59, %v1172_v60 }
0x1157   :  { %v2603_v2 = vadd.f32 %v1179_v62, %v1173_v63  ;;  %v1185_v18 = vpop.permute.xlu0 %1184 }
0x1158   :  { %1199 = vst.msk [vmem:[#allocation2] sm:$0x20] %vm1198_vm0, %v2601_v0  ;;  %v1206_v3 = vrot.slane %v2601_v0, 5  ;;  %v1187_v19 = vpop.permute.xlu1 %1186  ;;  %v1190_v20 = vmul.f32 %v1185_v18, %v2314_v12  ;;  %v1348_v51 = vrot.slane %v2601_v0, 7 }
0x1159   :  { %1202 = vst.msk [vmem:[#allocation2 - $0x3] sm:$0x20] %vm1201_vm4, %v2601_v0  ;;  %1203 = vst.msk [vmem:[#allocation2 + $0x5] sm:$0x20] %vm1201_vm4, %v2603_v2  ;;  %v1207_v4 = vrot.slane %v2603_v2, 4  ;;  %v1191_v21 = vmul.f32 %v1187_v19, %v2309_v10  ;;  %v1349_v52 = vrot.slane %v2603_v2, 7 }
0x115a   :  { %1200 = vst.msk [vmem:[#allocation2 + $0x8] sm:$0x20] %vm1198_vm0, %v2603_v2  ;;  %v2623_v25 = vadd.f32 %v1194_v22, %v1190_v20  ;;  %v1352_v54 = vmul.f32 %v1348_v51, %v2320_v14 }
0x115b   :  { %v1208_v5 = vsel %vm340_vm9, %v1207_v4, %v1206_v3  ;;  %v2625_v11 = vadd.f32 %v1195_v24, %v1191_v21  ;;  %v1353_v57 = vmul.f32 %v1349_v52, %v2317_v13 }
0x115c   :  { %1852 = vmatmul.mubr.msk.f32.vlgmr.msra.gmra.mrb[4].mxu0 %vm183_vm10, %v1208_v5  ;;  %v1296_v23 = vrot.slane %v2623_v25, 7 }
0x115d   :  { %v1297_v27 = vrot.slane %v2625_v11, 7 }
0x115f   :  { %v1369_v18 = vmul.f32 %v1297_v27, %v2317_v13 }
0x122f   :  { %v1277_v6 = vpop.f32.mrb[4].mxu0 }
0x1230   :  { %v1282_v9 = vrot.slane %v1277_v6, 2  ;;  %v1283_v7 = vrot.slane %v1277_v6, 3  ;;  %v1853_v8 = vpop.f32.mrb[5].mxu0 }
0x1232   :  { %v1286_v15 = vadd.f32 %v1282_v9, %v2293_v49  ;;  %v1287_v16 = vadd.f32 %v2290_v47, %v1283_v7 }
0x1234   :  { %2027 = vtanh.f32 %v1286_v15 }
0x1235   :  { %2029 = vtanh.f32 %v1287_v16  ;;  %v1368_v16 = vmul.f32 %v1296_v23, %v2320_v14 }
0x123e   :  { %v2028_v17 = vpop.eup %2027 }
0x123f   :  { %v2030_v1 = vpop.eup %2029  ;;  %1308 = vrot.lane.b32.xlu0 %v2028_v17, %s2126_s4  ;;  %v1290_v26 = vmul.f32 0.5, %v2028_v17 }
0x1240   :  { %1310 = vrot.lane.b32.xlu1 %v2030_v1, %s2126_s4  ;;  %v1291_v28 = vmul.f32 0.5, %v2030_v1 }
0x1241   :  { %v1292_v29 = vadd.f32 0.5, %v1290_v26 }
0x1242   :  { %v1293_v34 = vadd.f32 0.5, %v1291_v28 }
0x1243   :  { %1298 = vrot.lane.b32.xlu0 %v1296_v23, %s2126_s4 }
0x1244   :  { %1300 = vrot.lane.b32.xlu1 %v1297_v27, %s2126_s4 }
0x12b1   :  { %v1309_v30 = vpop.permute.xlu0 %1308 }
0x12b2   :  { %v1314_v31 = vmul.f32 %v1309_v30, %v1292_v29  ;;  %v1311_v36 = vpop.permute.xlu1 %1310 }
0x12b3   :  { %v1315_v33 = vmul.f32 %v1311_v36, %v1293_v34 }
0x12b4   :  { %1318 = vrot.lane.b32.xlu0 %v1314_v31, %s2126_s4 }
0x12b5   :  { %1320 = vrot.lane.b32.xlu1 %v1315_v33, %s2126_s4  ;;  %v1299_v35 = vpop.permute.xlu0 %1298 }
0x12b6   :  { %v1301_v39 = vpop.permute.xlu1 %1300  ;;  %v1304_v32 = vmul.f32 %v1299_v35, %v1292_v29 }
0x12b7   :  { %v1305_v37 = vmul.f32 %v1301_v39, %v1293_v34  ;;  %v1538_v39 = vld [vmem:[#allocation6] sm:$0xff] }
0x1326   :  { %v1319_v38 = vpop.permute.xlu0 %1318 }
0x1327   :  { %v1324_v40 = vadd.f32 %v1319_v38, %v1304_v32  ;;  %v1321_v42 = vpop.permute.xlu1 %1320  ;;  %v1539_v32 = vld [vmem:[#allocation6 + $0x8] sm:$0xff]  ;;  %v1540_v38 = vld [vmem:[#allocation6 + $0x10] sm:$0xff] }
0x1328   :  { %v1325_v41 = vadd.f32 %v1321_v42, %v1305_v37  ;;  %v1956_v37 = vpack.c.bf16 %v1539_v32, %v1538_v39 }
0x1329   :  { %2031 = vtanh.f32 %v1324_v40 }
0x132a   :  { %2033 = vtanh.f32 %v1325_v41  ;;  %1957 = vmatprep.subr.bf16.mxu0 %v1956_v37 }
0x132b   :  { %1959 = vmatpush3.bf16.msra.mxu0 %v1956_v37 }
0x1333   :  { %v2032_v43 = vpop.eup %2031 }
0x1334   :  { %v2034_v44 = vpop.eup %2033  ;;  %1330 = vrot.lane.b32.xlu0 %v2032_v43, %s2126_s4 }
0x1335   :  { %1332 = vrot.lane.b32.xlu1 %v2034_v44, %s2126_s4 }
0x13a6   :  { %v1331_v45 = vpop.permute.xlu0 %1330 }
0x13a7   :  { %v1336_v46 = vmul.f32 %v1331_v45, %v1292_v29  ;;  %v1333_v48 = vpop.permute.xlu1 %1332 }
0x13a8   :  { %v1337_v50 = vmul.f32 %v1333_v48, %v1293_v34  ;;  %v1631_v48 = vld [vmem:[%s2722_s3 + $0x8] sm:$0xff] }
0x13a9   :  { %1340 = vrot.lane.b32.xlu0 %v1336_v46, %s2127_s24  ;;  %v1630_v46 = vld [vmem:[%s2722_s3] sm:$0xff] }
0x13aa   :  { %1342 = vrot.lane.b32.xlu1 %v1337_v50, %s2127_s24 }
0x13ad   :  { %1358 = vrot.lane.b32.xlu0 %v1324_v40, %s2128_s25  ;;  %v1541_v40 = vld [vmem:[#allocation6 + $0x18] sm:$0xff] }
0x13ae   :  { %1360 = vrot.lane.b32.xlu1 %v1325_v41, %s2128_s25  ;;  %v1960_v42 = vpack.c.bf16 %v1541_v40, %v1540_v38 }
0x13b0   :  { %1961 = vmatprep.subr.bf16.mxu0 %v1960_v42 }
0x13b1   :  { %1963 = vmatpush3.bf16.msra.mxu0 %v1960_v42 }
0x141b   :  { %v1341_v53 = vpop.permute.xlu0 %1340 }
0x141c   :  { %v1346_v55 = vmul.f32 %v1341_v53, %v2314_v12  ;;  %v1343_v56 = vpop.permute.xlu1 %1342 }
0x141d   :  { %v1347_v58 = vmul.f32 %v1343_v56, %v2309_v10 }
0x141e   :  { %v2651_v59 = vadd.f32 %v1352_v54, %v1346_v55  ;;  %v2043_v54 = vld [vmem:[%s2721_s2] sm:$0xff] }
0x141f   :  { %v2653_v60 = vadd.f32 %v1353_v57, %v1347_v58  ;;  %v1359_v9 = vpop.permute.xlu0 %1358  ;;  %v2044_v58 = vld [vmem:[%s2721_s2 + $0x8] sm:$0xff]  ;;  %s2129_s2 = smov [#allocation8]  }
0x1420   :  { %1373 = vst.msk [vmem:[#allocation2] sm:$0x40] %vm1372_vm5, %v2651_v59  ;;  %v1380_v61 = vrot.slane %v2651_v59, 6  ;;  %v1361_v7 = vpop.permute.xlu1 %1360  ;;  %v1364_v8 = vmul.f32 %v1359_v9, %v2314_v12  ;;  %v1522_v50 = vrot.slane %v2651_v59, 7  ;;  %s1651_s14 = sshll.u32 %s2129_s2, 4  ;;  %s1652_s14 = int_to_ptr.vmem [resolvable:$true] %s1651_s14 }
0x1421   :  { %1376 = vst.msk [vmem:[#allocation2 - $0x5] sm:$0x40] %vm1375_vm6, %v2651_v59  ;;  %1377 = vst.msk [vmem:[#allocation2 + $0x3] sm:$0x40] %vm1375_vm6, %v2653_v60  ;;  %v1381_v62 = vrot.slane %v2653_v60, 5  ;;  %v1365_v15 = vmul.f32 %v1361_v7, %v2309_v10  ;;  %v1523_v51 = vrot.slane %v2653_v60, 7  ;;  %p2094_p3 = scmp.lt.s32.totalorder %s1652_s14, %s1652_s14 }
0x1422   :  { %1374 = vst.msk [vmem:[#allocation2 + $0x8] sm:$0x40] %vm1372_vm5, %v2653_v60  ;;  %v1370_v19 = vadd.f32 %v1368_v16, %v1364_v8  ;;  %v1526_v53 = vmul.f32 %v1522_v50, %v2320_v14  ;;  %s2089_s17 = scalar_lea.vmem %s1652_s14, 256 }
0x1423   :  { %v1382_v63 = vsel %vm340_vm9, %v1381_v62, %v1380_v61  ;;  %v1371_v20 = vadd.f32 %v1369_v18, %v1365_v15  ;;  %v1527_v57 = vmul.f32 %v1523_v51, %v2317_v13  ;;  %v1675_v13 = vld [vmem:[%s2726_s7] ss:$0 sm:$0xff]  ;;  %p2090_p2 = scmp.ne.s32.totalorder %s1652_s14, %s2089_s17  ;;  %p2095_p4 = scmp.lt.s32.totalorder %s2089_s17, %s2089_s17 }
0x1424   :  { %1863 = vmatmul.mubr.msk.f32.vlgmr.msra.gmra.mrb[10].mxu1 %vm183_vm10, %v1382_v63  ;;  %v1470_v21 = vrot.slane %v1370_v19, 7 }
0x1425   :  { %v1471_v12 = vrot.slane %v1371_v20, 7  ;;  %p2096_p5 = por %p2095_p4, %p2094_p3 }
0x1427   :  { %p2097_p6 = pnand %p2096_p5, %p2090_p2 }
0x14f7   :  { %v1451_v0 = vpop.f32.mrb[10].mxu1 }
0x14f8   :  { %v1456_v2 = vrot.slane %v1451_v0, 1  ;;  %v1457_v3 = vrot.slane %v1451_v0, 2  ;;  %v1864_v4 = vpop.f32.mrb[11].mxu1 }
0x14fa   :  { %v1460_v5 = vadd.f32 %v1456_v2, %v2293_v49  ;;  %v1461_v6 = vadd.f32 %v2290_v47, %v1457_v3 }
0x14fc   :  { %2035 = vtanh.f32 %v1460_v5 }
0x14fd   :  { %2037 = vtanh.f32 %v1461_v6 }
0x1506   :  { %v2036_v49 = vpop.eup %2035 }
0x1507   :  { %v2038_v47 = vpop.eup %2037  ;;  %1482 = vrot.lane.b32.xlu0 %v2036_v49, %s2126_s4  ;;  %v1464_v10 = vmul.f32 0.5, %v2036_v49 }
0x1508   :  { %1484 = vrot.lane.b32.xlu1 %v2038_v47, %s2126_s4  ;;  %v1465_v22 = vmul.f32 0.5, %v2038_v47 }
0x1509   :  { %v1466_v24 = vadd.f32 0.5, %v1464_v10 }
0x150a   :  { %v1467_v17 = vadd.f32 0.5, %v1465_v22 }
0x150b   :  { %1472 = vrot.lane.b32.xlu0 %v1470_v21, %s2126_s4 }
0x150c   :  { %1474 = vrot.lane.b32.xlu1 %v1471_v12, %s2126_s4 }
0x1579   :  { %v1483_v25 = vpop.permute.xlu0 %1482 }
0x157a   :  { %v1488_v11 = vmul.f32 %v1483_v25, %v1466_v24  ;;  %v1485_v1 = vpop.permute.xlu1 %1484 }
0x157b   :  { %v1489_v23 = vmul.f32 %v1485_v1, %v1467_v17 }
0x157c   :  { %1492 = vrot.lane.b32.xlu0 %v1488_v11, %s2126_s4 }
0x157d   :  { %1494 = vrot.lane.b32.xlu1 %v1489_v23, %s2126_s4  ;;  %v1473_v27 = vpop.permute.xlu0 %1472 }
0x157e   :  { %v1475_v26 = vpop.permute.xlu1 %1474  ;;  %v1478_v28 = vmul.f32 %v1473_v27, %v1466_v24 }
0x157f   :  { %v1479_v29 = vmul.f32 %v1475_v26, %v1467_v17 }
0x15ee   :  { %v1493_v30 = vpop.permute.xlu0 %1492 }
0x15ef   :  { %v1498_v34 = vadd.f32 %v1493_v30, %v1478_v28  ;;  %v1495_v31 = vpop.permute.xlu1 %1494 }
0x15f0   :  { %v1499_v36 = vadd.f32 %v1495_v31, %v1479_v29 }
0x15f1   :  { %2039 = vtanh.f32 %v1498_v34 }
0x15f2   :  { %2041 = vtanh.f32 %v1499_v36 }
0x15fb   :  { %v2040_v33 = vpop.eup %2039 }
0x15fc   :  { %v2042_v35 = vpop.eup %2041  ;;  %1504 = vrot.lane.b32.xlu0 %v2040_v33, %s2126_s4 }
0x15fd   :  { %1506 = vrot.lane.b32.xlu1 %v2042_v35, %s2126_s4 }
0x166e   :  { %v1505_v41 = vpop.permute.xlu0 %1504 }
0x166f   :  { %v1510_v43 = vmul.f32 %v1505_v41, %v1466_v24  ;;  %v1507_v44 = vpop.permute.xlu1 %1506 }
0x1670   :  { %v1511_v45 = vmul.f32 %v1507_v44, %v1467_v17 }
0x1671   :  { %1514 = vrot.lane.b32.xlu0 %v1510_v43, %s2127_s24 }
0x1672   :  { %1516 = vrot.lane.b32.xlu1 %v1511_v45, %s2127_s24 }
0x1675   :  { %1634 = vperm.xlu0 %1977, %v1630_v46  }
0x1676   :  { %1639 = vperm.xlu1 %1978, %v1631_v48  }
0x16e3   :  { %v1515_v52 = vpop.permute.xlu0 %1514 }
0x16e4   :  { %v1520_v55 = vmul.f32 %v2043_v54, %v1515_v52  ;;  %v1517_v56 = vpop.permute.xlu1 %1516 }
0x16e5   :  { %v1521_v59 = vmul.f32 %v2044_v58, %v1517_v56 }
0x16e6   :  { %v1528_v61 = vadd.f32 %v1526_v53, %v1520_v55 }
0x16e7   :  { %v1529_v60 = vadd.f32 %v1527_v57, %v1521_v59 }
0x16e8   :  { %1531 = vst.msk [vmem:[#allocation2] sm:$0x80] %vm1530_vm7, %v1528_v61 }
0x16e9   :  { %1534 = vst.msk [vmem:[#allocation2 - $0x7] sm:$0x80] %vm1533_vm8, %v1528_v61  ;;  %1535 = vst.msk [vmem:[#allocation2 + $0x1] sm:$0x80] %vm1533_vm8, %v1529_v60 }
0x16ea   :  { %1532 = vst.msk [vmem:[#allocation2 + $0x8] sm:$0x80] %vm1530_vm7, %v1529_v60 }
0x16f0   :  { %v1536_v14 = vld [vmem:[#allocation2] sm:$0xff] }
0x16f1   :  { %1873 = vmatprep.mubr.msk.f32.mxu0 %vm183_vm10, %v1536_v14  ;;  %v1537_v62 = vld [vmem:[#allocation2 + $0x8] sm:$0xff] }
0x16f2   :  { %1874 = vmatmul.mubr.msk.f32.vlgmr.msra.gmra.mrb[6].mxu0 %vm183_vm10, %v1537_v62 }
0x16f4   :  { %v1635_v5 = vpop.permute.xlu0 %1634 }
0x16f5   :  { %v1640_v3 = vpop.permute.xlu1 %1639 }
0x17c5   :  { %v1875_v63 = vpop.f32.mrb[6].mxu0 }
0x17c6   :  { %v1627_v0 = vadd.f32 %v1875_v63, %v1675_v13  ;;  %v1621_v2 = vpop.f32.mrb[7].mxu0 }
0x17c7   :  { %v1622_v4 = vadd.f32 %v1675_v13, %v1621_v2 }
0x17c8   :  { %v1643_v6 = vmul.f32 %v1640_v3, %v1627_v0 }
0x17c9   :  { %v1642_v9 = vmul.f32 %v1635_v5, %v1622_v4 }
0x17ca   :  { %1645 = vst [vmem:[#allocation8 + $0x8] sm:$0xff] %v1643_v6 }
0x17cb   :  { %1644 = vst [vmem:[#allocation8] sm:$0xff] %v1642_v9 }
0x17cc   :  { %2100 = shalt.err (!%p2097_p6)
}
0x17cd   :  { %s2101_s19 = scalar_lea.hbm %s2727_s8, 256 }
0x17ce   :  { %p2102_p7 = scmp.ne.s32.totalorder %s2727_s8, %s2101_s19  ;;  %p2105_p8 = scmp.lt.u32.totalorder %s2101_s19, %s2727_s8 }
0x17d0   :  { %p2107_p9 = pnand %p2105_p8, %p2102_p7 }
0x17d2   :  { %2110 = shalt.err (!%p2107_p9)
}
0x17d3   :  { %1657 = dma.vmem_to_hbm [thread:$0]  %s1652_s14, 256, %s2727_s8, [#allocation5], %s2118_s15, %s2118_s15, %s2119_s16  }
0x17d4   :  { %2115 = dma.done.wait [#allocation5], 256  }
0x17d5   :  { %2116 = vsyncadd [#allocation5], 4294967040 }
0x17d6   :  { %1661 = vsyncpa [#allocation4], 1 }
0x17d7   :  { %1662 = vsyncpa [#allocation7], 1 }
0x17d8   :  { %1663 = vsyncpa [#allocation5], 1 }

</bundles_post_ra>
